<compile_context>
chip_gen: v7x
topology: tpu7x:2x2x1
jax: 0.10.0
libtpu: 0.0.40
codegen_flags: <defaults>
</compile_context>

<pallas_src>
import functools

import jax
import jax.numpy as jnp
from jax.experimental import pallas as pl
from jax.experimental.pallas import tpu as pltpu


def _round_up(x, m):
    return (x + m - 1) // m * m


def _vmem_limit(*buf_bytes):
    total = sum(buf_bytes)
    return int(min(max(total + (4 << 20), 16 << 20), 64 << 20))


# --------------------------------------------------------------------------------------
# Kernel 1: sequential GRU recurrence.
# Grid = (batch tiles [parallel], T chunks [arbitrary]); f32 hidden carry in VMEM scratch.
# --------------------------------------------------------------------------------------
def _gru_recurrence_kernel(gi_ref, h0_ref, whh_ref, bhh_n_ref, h_all_ref, h_carry,
                           *, t_chunk, nhid_p, unroll):
    @pl.when(pl.program_id(1) == 0)
    def _():
        h_carry[...] = h0_ref[...]

    whh = whh_ref[...]            # (nhid_p, 3*nhid_p) bf16, hoisted out of the time loop
    bhh_n = bhh_n_ref[...]        # (1, nhid_p) f32

    def step(t, h):
        hb = h.astype(jnp.bfloat16)                    # bf16 matmul operand; carry stays f32
        hg = jnp.dot(hb, whh, preferred_element_type=jnp.float32)   # one MXU push per step
        h_r = hg[:, :nhid_p]
        h_z = hg[:, nhid_p:2 * nhid_p]
        h_n = hg[:, 2 * nhid_p:] + bhh_n
        gi = gi_ref[t]                                 # (B_TILE, 3*nhid_p) bf16
        r = jax.nn.sigmoid(gi[:, :nhid_p] + h_r)       # b_ir + b_hr already folded into gi
        z = jax.nn.sigmoid(gi[:, nhid_p:2 * nhid_p] + h_z)
        n = jnp.tanh(gi[:, 2 * nhid_p:] + r * h_n)     # only b_hn stays in-loop (scaled by r)
        h_new = (1.0 - z) * n + z * h
        h_all_ref[t] = h_new.astype(h_all_ref.dtype)   # bf16 lane-dense store
        return h_new

    h_carry[...] = jax.lax.fori_loop(0, t_chunk, step, h_carry[...], unroll=unroll)


# --------------------------------------------------------------------------------------
# Kernel 2a: per-row logsumexp over vocab tiles (online max/sum in VMEM scratch).
# Grid = (row tiles [parallel], vocab tiles [arbitrary, last]).
# --------------------------------------------------------------------------------------
def _mapper_lse_kernel(h_ref, w_ref, b_ref, lse_ref, m_sc, l_sc):
    j = pl.program_id(1)

    @pl.when(j == 0)
    def _():
        m_sc[...] = jnp.full_like(m_sc, -jnp.inf)
        l_sc[...] = jnp.zeros_like(l_sc)

    dec = jnp.dot(h_ref[...], w_ref[...], preferred_element_type=jnp.float32) + b_ref[...]
    m_new = jnp.maximum(m_sc[...], jnp.max(dec, axis=-1, keepdims=True))
    l_sc[...] = (l_sc[...] * jnp.exp(m_sc[...] - m_new)
                 + jnp.sum(jnp.exp(dec - m_new), axis=-1, keepdims=True))
    m_sc[...] = m_new

    @pl.when(j == pl.num_programs(1) - 1)
    def _():
        lse_ref[...] = m_sc[...] + jnp.log(l_sc[...])


# --------------------------------------------------------------------------------------
# Kernel 2b: recompute the logits tile and write logp = dec - lse (output written once).
# Grid = (vocab tiles, row tiles) -> weight tile stays resident, full weight read once.
# --------------------------------------------------------------------------------------
def _mapper_logp_kernel(h_ref, w_ref, b_ref, lse_ref, out_ref):
    dec = jnp.dot(h_ref[...], w_ref[...], preferred_element_type=jnp.float32) + b_ref[...]
    out_ref[...] = dec - lse_ref[...]


def pyfred_forward(a, src, trg, hidden, params):
    """Forward pass of pyfred with teacher_forcing_ratio=1.

    a:      (B, 1)  int32 agent indices
    src:    (B, S)  int32 token indices
    trg:    (B, T)  int32 token indices
    hidden: (B, nhid) float32 initial GRU hidden state
    returns (B, T, nw) float32 log-probabilities
    """
    W = params["W"]                 # (nw, r)
    A = params["A"]                 # (na, r)
    w_ih = params["gru_w_ih"]       # (3*nhid, 2r)
    w_hh = params["gru_w_hh"]       # (3*nhid, nhid)
    b_ih = params["gru_b_ih"]       # (3*nhid,)
    b_hh = params["gru_b_hh"]       # (3*nhid,)
    w_map = params["mapper_w"]      # (nw, nhid)
    b_map = params["mapper_b"]      # (nw,)

    B = a.shape[0]
    T = trg.shape[1]
    r = W.shape[1]
    nhid = hidden.shape[1]
    nw = W.shape[0]

    nhid_p = _round_up(nhid, 128)

    # Batch tiling: fill the MXU M dim (up to 128 rows). Tiny B -> single tile; the win
    # there comes from the fused recurrent matmul instead.
    B_TILE = min(128, _round_up(B, 8))
    B_pad = _round_up(B, B_TILE)

    # T-chunking: keep the (T_CHUNK, B_TILE, 3*nhid_p) bf16 gi block <= ~8 MiB so a wide
    # batch tile still fits VMEM; chunks double-buffer behind the recurrence.
    max_tc = max(8, (8 << 20) // (B_TILE * 3 * nhid_p * 2))
    T_CHUNK = min(T, max_tc)
    T_pad = _round_up(T, T_CHUNK)

    # --- glue: embedding gathers + hoisted input-side GRU matmul (all T at once) -------
    tokens = jnp.concatenate([src[:, 0:1], trg[:, : T - 1]], axis=1)      # (B, T)
    w_embds = jnp.take(W, tokens, axis=0)                                 # (B, T, r)
    a_embds = jnp.take(A, a[:, 0], axis=0)[:, None, :]                    # (B, 1, r)
    a_embds = jnp.broadcast_to(a_embds, (B, T, r))
    x_all = jnp.concatenate([a_embds, w_embds], axis=-1).astype(jnp.float32)  # (B, T, 2r)
    x_all = jnp.pad(x_all, ((0, B_pad - B), (0, 0), (0, 0)))
    x_tm = jnp.transpose(x_all, (1, 0, 2))                                # (T, B_pad, 2r)

    w_ih_t = jnp.transpose(w_ih).astype(jnp.bfloat16)                     # (2r, 3*nhid)
    gi_raw = jnp.dot(x_tm.astype(jnp.bfloat16), w_ih_t,
                     preferred_element_type=jnp.float32)                  # (T, B_pad, 3*nhid)

    # Per gate: add b_ih (+ time-invariant b_hr / b_hz folded in), pad lanes to nhid_p.
    def _gate_in(k, extra_hh_bias):
        g = gi_raw[..., k * nhid:(k + 1) * nhid]
        g = g + (b_ih[k * nhid:(k + 1) * nhid] + extra_hh_bias).astype(jnp.float32)
        return jnp.pad(g, ((0, 0), (0, 0), (0, nhid_p - nhid)))

    gi = jnp.concatenate(
        [_gate_in(0, b_hh[0:nhid]),          # reset gate (+ b_hr)
         _gate_in(1, b_hh[nhid:2 * nhid]),   # update gate (+ b_hz)
         _gate_in(2, 0.0)],                  # new gate (b_hn stays in-kernel)
        axis=-1).astype(jnp.bfloat16)                                     # (T, B_pad, 3*nhid_p)
    gi = jnp.pad(gi, ((0, T_pad - T), (0, 0), (0, 0)))

    def _whh_gate(k):
        wk = jnp.transpose(w_hh[k * nhid:(k + 1) * nhid])                 # (nhid, nhid)
        return jnp.pad(wk, ((0, nhid_p - nhid), (0, nhid_p - nhid)))
    whh = jnp.concatenate([_whh_gate(0), _whh_gate(1), _whh_gate(2)],
                          axis=-1).astype(jnp.bfloat16)                   # (nhid_p, 3*nhid_p)

    bhh_n = jnp.pad(b_hh[2 * nhid:3 * nhid].astype(jnp.float32),
                    (0, nhid_p - nhid)).reshape(1, nhid_p)

    h0 = jnp.pad(hidden.astype(jnp.float32),
                 ((0, B_pad - B), (0, nhid_p - nhid)))                    # (B_pad, nhid_p)

    # --- Pallas kernel 1: sequential recurrence ----------------------------------------
    t_unroll = T_CHUNK if T_CHUNK <= 16 else 4
    gru_kernel = functools.partial(_gru_recurrence_kernel,
                                   t_chunk=T_CHUNK, nhid_p=nhid_p, unroll=t_unroll)

    k1_vmem = _vmem_limit(
        2 * T_CHUNK * B_TILE * 3 * nhid_p * 2,    # gi input (bf16, double-buffered)
        2 * T_CHUNK * B_TILE * nhid_p * 2,        # h_all output (bf16)
        2 * B_TILE * nhid_p * 4,                  # h0
        2 * nhid_p * 3 * nhid_p * 2,              # fused whh
        B_TILE * nhid_p * 4,                      # carry scratch
    )

    h_all = pl.pallas_call(
        gru_kernel,
        out_shape=jax.ShapeDtypeStruct((T_pad, B_pad, nhid_p), jnp.bfloat16),
        grid_spec=pltpu.PrefetchScalarGridSpec(
            num_scalar_prefetch=0,
            grid=(B_pad // B_TILE, T_pad // T_CHUNK),
            in_specs=[
                pl.BlockSpec((T_CHUNK, B_TILE, 3 * nhid_p), lambda b, tc: (tc, b, 0)),  # gi
                pl.BlockSpec((B_TILE, nhid_p), lambda b, tc: (b, 0)),                   # h0
                pl.BlockSpec((nhid_p, 3 * nhid_p), lambda b, tc: (0, 0)),               # whh
                pl.BlockSpec((1, nhid_p), lambda b, tc: (0, 0)),                        # bhh_n
            ],
            out_specs=pl.BlockSpec((T_CHUNK, B_TILE, nhid_p), lambda b, tc: (tc, b, 0)),
            scratch_shapes=[pltpu.VMEM((B_TILE, nhid_p), jnp.float32)],
        ),
        compiler_params=pltpu.CompilerParams(
            dimension_semantics=("parallel", "arbitrary"),
            vmem_limit_bytes=k1_vmem,
        ),
    )(gi, h0, whh, bhh_n)

    # --- Pallas kernel 2: mapper + log_softmax, vocab-tiled online logsumexp ------------
    rows = B_pad * T
    ROW_TILE = 256 if rows >= 256 else _round_up(rows, 8)
    rows_pad = _round_up(rows, ROW_TILE)
    # Larger row tile for the lse pass (its output is tiny) to cut repeated weight reads.
    LSE_ROW_TILE = ROW_TILE
    for k in (4, 3, 2):
        if k * ROW_TILE <= rows_pad and rows_pad % (k * ROW_TILE) == 0:
            LSE_ROW_TILE = k * ROW_TILE
            break

    nw_p128 = _round_up(nw, 128)
    NW_TILE = min(2048, nw_p128)
    nw_pad = _round_up(nw, NW_TILE)
    n_vt = nw_pad // NW_TILE

    # Small transpose on the hidden tensor only (nhid << nw); already bf16.
    hbt = jnp.transpose(h_all[:T], (1, 0, 2)).reshape(rows, nhid_p)
    hbt = jnp.pad(hbt, ((0, rows_pad - rows), (0, 0)))

    w_map_t = jnp.pad(jnp.transpose(w_map),
                      ((0, nhid_p - nhid), (0, nw_pad - nw))).astype(jnp.bfloat16)
    b_map_p = jnp.pad(b_map.astype(jnp.float32), (0, nw_pad - nw),
                      constant_values=-1e30).reshape(1, nw_pad)   # padded logits -> ~-inf

    k2a_vmem = _vmem_limit(
        2 * LSE_ROW_TILE * nhid_p * 2,            # h rows
        2 * nhid_p * NW_TILE * 2,                 # weight tile
        2 * NW_TILE * 4,                          # bias tile
        2 * LSE_ROW_TILE * 4,                     # lse output
        2 * LSE_ROW_TILE * 4 * 2,                 # m/l scratch
    )
    lse = pl.pallas_call(
        _mapper_lse_kernel,
        out_shape=jax.ShapeDtypeStruct((rows_pad, 1), jnp.float32),
        grid_spec=pltpu.PrefetchScalarGridSpec(
            num_scalar_prefetch=0,
            grid=(rows_pad // LSE_ROW_TILE, n_vt),            # vocab axis last (reduction)
            in_specs=[
                pl.BlockSpec((LSE_ROW_TILE, nhid_p), lambda i, j: (i, 0)),
                pl.BlockSpec((nhid_p, NW_TILE), lambda i, j: (0, j)),
                pl.BlockSpec((1, NW_TILE), lambda i, j: (0, j)),
            ],
            out_specs=pl.BlockSpec((LSE_ROW_TILE, 1), lambda i, j: (i, 0)),
            scratch_shapes=[pltpu.VMEM((LSE_ROW_TILE, 1), jnp.float32),
                            pltpu.VMEM((LSE_ROW_TILE, 1), jnp.float32)],
        ),
        compiler_params=pltpu.CompilerParams(
            dimension_semantics=("parallel", "arbitrary"),
            vmem_limit_bytes=k2a_vmem,
        ),
    )(hbt, w_map_t, b_map_p)

    k2b_vmem = _vmem_limit(
        2 * ROW_TILE * nhid_p * 2,                # h rows
        2 * nhid_p * NW_TILE * 2,                 # weight tile
        2 * NW_TILE * 4,                          # bias tile
        2 * ROW_TILE * 4,                         # lse rows
        2 * ROW_TILE * NW_TILE * 4,               # logp output tile
    )
    logp = pl.pallas_call(
        _mapper_logp_kernel,
        out_shape=jax.ShapeDtypeStruct((rows_pad, nw_pad), jnp.float32),
        grid_spec=pltpu.PrefetchScalarGridSpec(
            num_scalar_prefetch=0,
            # vocab outer / rows inner: the weight tile stays resident while the small
            # h row tiles stream -> the full mapper weight is read from HBM only once.
            grid=(n_vt, rows_pad // ROW_TILE),
            in_specs=[
                pl.BlockSpec((ROW_TILE, nhid_p), lambda j, i: (i, 0)),
                pl.BlockSpec((nhid_p, NW_TILE), lambda j, i: (0, j)),
                pl.BlockSpec((1, NW_TILE), lambda j, i: (0, j)),
                pl.BlockSpec((ROW_TILE, 1), lambda j, i: (i, 0)),
            ],
            out_specs=pl.BlockSpec((ROW_TILE, NW_TILE), lambda j, i: (i, j)),
        ),
        compiler_params=pltpu.CompilerParams(
            dimension_semantics=("parallel", "parallel"),
            vmem_limit_bytes=k2b_vmem,
        ),
    )(hbt, w_map_t, b_map_p, lse)

    # Row-major (B_pad, T, nw_pad) falls out of a free reshape; strip padding.
    out = logp[:rows].reshape(B_pad, T, nw_pad)[:B, :, :nw]
    return out


def init_params(key, *, nw, r, na, nhid):
    ks = jax.random.split(key, 8)
    scale_gru = 1.0 / jnp.sqrt(nhid)
    scale_map = 1.0 / jnp.sqrt(nhid)
    return {
        "W": jax.random.normal(ks[0], (nw, r), jnp.float32) * 0.1,
        "A": jax.random.normal(ks[1], (na, r), jnp.float32) * 0.1,
        "gru_w_ih": jax.random.uniform(ks[2], (3 * nhid, 2 * r), jnp.float32,
                                       -scale_gru, scale_gru),
        "gru_w_hh": jax.random.uniform(ks[3], (3 * nhid, nhid), jnp.float32,
                                       -scale_gru, scale_gru),
        "gru_b_ih": jax.random.uniform(ks[4], (3 * nhid,), jnp.float32,
                                       -scale_gru, scale_gru),
        "gru_b_hh": jax.random.uniform(ks[5], (3 * nhid,), jnp.float32,
                                       -scale_gru, scale_gru),
        "mapper_w": jax.random.uniform(ks[6], (nw, nhid), jnp.float32,
                                       -scale_map, scale_map),
        "mapper_b": jax.random.uniform(ks[7], (nw,), jnp.float32,
                                       -scale_map, scale_map),
    }


if __name__ == "__main__":
    # Small shapes consistent with the module's forward.
    B, T, S = 2, 8, 8      # batch, target length, source length
    nw, r = 50, 8          # vocab size, embedding rank
    na, nhid = 6, 32       # number of agents, GRU hidden size

    key = jax.random.PRNGKey(0)
    k_p, k_a, k_src, k_trg, k_h = jax.random.split(key, 5)

    params = init_params(k_p, nw=nw, r=r, na=na, nhid=nhid)

    a = jax.random.randint(k_a, (B, 1), 0, na, jnp.int32)
    src = jax.random.randint(k_src, (B, S), 0, nw, jnp.int32)
    trg = jax.random.randint(k_trg, (B, T), 0, nw, jnp.int32)
    hidden = jax.random.normal(k_h, (B, nhid), jnp.float32)

    out = pyfred_forward(a, src, trg, hidden, params)
    out = jax.block_until_ready(out)

    assert out.shape == (B, T, nw)
    # log_softmax rows should exponentiate-sum to ~1
    assert bool(jnp.all(jnp.isfinite(out)))
    assert bool(jnp.allclose(jnp.sum(jnp.exp(out), axis=-1), 1.0, atol=1e-3))
    print("KERNEL_OK")
</pallas_src>

<mosaic_0001>
module attributes {stable_mosaic.version = 11 : i64} {
  func.func @_gru_recurrence_kernel(%arg0: i32, %arg1: i32, %arg2: memref<8x8x384xbf16, #tpu.memory_space<vmem>>, %arg3: memref<8x128xf32, #tpu.memory_space<vmem>>, %arg4: memref<128x384xbf16, #tpu.memory_space<vmem>>, %arg5: memref<1x128xf32, #tpu.memory_space<vmem>>, %arg6: memref<8x8x128xbf16, #tpu.memory_space<vmem>>, %arg7: memref<8x128xf32, #tpu.memory_space<vmem>>) attributes {dimension_semantics = [#tpu.dimension_semantics<parallel>, #tpu.dimension_semantics<arbitrary>], iteration_bounds = array<i64: 1, 1>, scalar_prefetch = 0 : i64, scratch_operands = 1 : i64, tpu.core_type = #tpu.core_type<tc>, window_params = [{transform_indices = @transform_0, window_bounds = array<i64: 8, 8, 384>}, {transform_indices = @transform_1, window_bounds = array<i64: 8, 128>}, {pipeline_mode = #tpu.pipeline_mode<synchronous>, transform_indices = @transform_2, window_bounds = array<i64: 128, 384>}, {pipeline_mode = #tpu.pipeline_mode<synchronous>, transform_indices = @transform_3, window_bounds = array<i64: 1, 128>}, {transform_indices = @transform_4, window_bounds = array<i64: 8, 8, 128>}]} {
    %c0_i32 = arith.constant 0 : i32
    %0 = arith.cmpi eq, %arg1, %c0_i32 : i32
    %1 = arith.extui %0 : i1 to i32
    %c0_i32_0 = arith.constant 0 : i32
    %2 = arith.cmpi ne, %1, %c0_i32_0 : i32
    scf.if %2 {
      %c0_72 = arith.constant 0 : index
      %c0_73 = arith.constant 0 : index
      %335 = vector.load %arg3[%c0_72, %c0_73] : memref<8x128xf32, #tpu.memory_space<vmem>>, vector<8x128xf32>
      %c0_74 = arith.constant 0 : index
      %c0_75 = arith.constant 0 : index
      %336 = vector.load %arg7[%c0_74, %c0_75] : memref<8x128xf32, #tpu.memory_space<vmem>>, vector<8x128xf32>
      tpu.vector_store %arg7[%c0_74, %c0_75], %335 {strides = array<i32>} : memref<8x128xf32, #tpu.memory_space<vmem>>, vector<8x128xf32>,
    } else {
    }
    %c0 = arith.constant 0 : index
    %c0_1 = arith.constant 0 : index
    %3 = vector.load %arg4[%c0, %c0_1] : memref<128x384xbf16, #tpu.memory_space<vmem>>, vector<128x384xbf16>
    %c0_2 = arith.constant 0 : index
    %c0_3 = arith.constant 0 : index
    %4 = vector.load %arg5[%c0_2, %c0_3] : memref<1x128xf32, #tpu.memory_space<vmem>>, vector<1x128xf32>
    %c0_4 = arith.constant 0 : index
    %c0_5 = arith.constant 0 : index
    %5 = vector.load %arg7[%c0_4, %c0_5] : memref<8x128xf32, #tpu.memory_space<vmem>>, vector<8x128xf32>
    %c0_i32_6 = arith.constant 0 : i32
    %6 = arith.truncf %5 : vector<8x128xf32> to vector<8x128xbf16>
    %cst = arith.constant dense<0.000000e+00> : vector<8x384xf32>
    %7 = tpu.matmul %6, %3, %cst {dimension_numbers = #tpu.dot_dimension_numbers<[1], [0], [0], [1], [0, 0, 1, 1], [], []>} : vector<8x128xbf16>, vector<128x384xbf16>, vector<8x384xf32> -> vector<8x384xf32>
    %8 = vector.extract_strided_slice %7 {offsets = [0, 0], sizes = [8, 128], strides = [1, 1]} : vector<8x384xf32> to vector<8x128xf32>
    %9 = vector.extract_strided_slice %7 {offsets = [0, 128], sizes = [8, 128], strides = [1, 1]} : vector<8x384xf32> to vector<8x128xf32>
    %10 = vector.extract_strided_slice %7 {offsets = [0, 256], sizes = [8, 128], strides = [1, 1]} : vector<8x384xf32> to vector<8x128xf32>
    %11 = vector.broadcast %4 : vector<1x128xf32> to vector<8x128xf32>
    %12 = arith.addf %10, %11 : vector<8x128xf32>
    %13 = arith.index_cast %c0_i32_6 : i32 to index
    %c0_7 = arith.constant 0 : index
    %c0_8 = arith.constant 0 : index
    %14 = vector.load %arg2[%13, %c0_7, %c0_8] : memref<8x8x384xbf16, #tpu.memory_space<vmem>>, vector<1x8x384xbf16>
    %15 = vector.shape_cast %14 : vector<1x8x384xbf16> to vector<8x384xbf16>
    %16 = vector.extract_strided_slice %15 {offsets = [0, 0], sizes = [8, 128], strides = [1, 1]} : vector<8x384xbf16> to vector<8x128xbf16>
    %17 = arith.extf %16 : vector<8x128xbf16> to vector<8x128xf32>
    %18 = arith.addf %17, %8 : vector<8x128xf32>
    %19 = arith.negf %18 : vector<8x128xf32>
    %20 = math.exp %19 : vector<8x128xf32>
    %cst_9 = arith.constant 1.000000e+00 : f32
    %21 = vector.broadcast %cst_9 : f32 to vector<8x128xf32>
    %22 = arith.addf %21, %20 : vector<8x128xf32>
    %23 = arith.divf %21, %22 : vector<8x128xf32>
    %24 = vector.extract_strided_slice %15 {offsets = [0, 128], sizes = [8, 128], strides = [1, 1]} : vector<8x384xbf16> to vector<8x128xbf16>
    %25 = arith.extf %24 : vector<8x128xbf16> to vector<8x128xf32>
    %26 = arith.addf %25, %9 : vector<8x128xf32>
    %27 = arith.negf %26 : vector<8x128xf32>
    %28 = math.exp %27 : vector<8x128xf32>
    %cst_10 = arith.constant 1.000000e+00 : f32
    %29 = vector.broadcast %cst_10 : f32 to vector<8x128xf32>
    %30 = arith.addf %29, %28 : vector<8x128xf32>
    %31 = arith.divf %29, %30 : vector<8x128xf32>
    %32 = vector.extract_strided_slice %15 {offsets = [0, 256], sizes = [8, 128], strides = [1, 1]} : vector<8x384xbf16> to vector<8x128xbf16>
    %33 = arith.mulf %23, %12 : vector<8x128xf32>
    %34 = arith.extf %32 : vector<8x128xbf16> to vector<8x128xf32>
    %35 = arith.addf %34, %33 : vector<8x128xf32>
    %36 = math.tanh %35 : vector<8x128xf32>
    %cst_11 = arith.constant 1.000000e+00 : f32
    %37 = vector.broadcast %cst_11 : f32 to vector<8x128xf32>
    %38 = arith.subf %37, %31 : vector<8x128xf32>
    %39 = arith.mulf %38, %36 : vector<8x128xf32>
    %40 = arith.mulf %31, %5 : vector<8x128xf32>
    %41 = arith.addf %39, %40 : vector<8x128xf32>
    %42 = arith.truncf %41 : vector<8x128xf32> to vector<8x128xbf16>
    %43 = arith.index_cast %c0_i32_6 : i32 to index
    %c0_12 = arith.constant 0 : index
    %c0_13 = arith.constant 0 : index
    %44 = vector.load %arg6[%43, %c0_12, %c0_13] : memref<8x8x128xbf16, #tpu.memory_space<vmem>>, vector<1x8x128xbf16>
    %45 = vector.shape_cast %44 : vector<1x8x128xbf16> to vector<8x128xbf16>
    %46 = vector.shape_cast %42 : vector<8x128xbf16> to vector<1x8x128xbf16>
    tpu.vector_store %arg6[%43, %c0_12, %c0_13], %46 {strides = array<i32>} : memref<8x8x128xbf16, #tpu.memory_space<vmem>>, vector<1x8x128xbf16>,
    %c1_i32 = arith.constant 1 : i32
    %47 = arith.truncf %41 : vector<8x128xf32> to vector<8x128xbf16>
    %cst_14 = arith.constant dense<0.000000e+00> : vector<8x384xf32>
    %48 = tpu.matmul %47, %3, %cst_14 {dimension_numbers = #tpu.dot_dimension_numbers<[1], [0], [0], [1], [0, 0, 1, 1], [], []>} : vector<8x128xbf16>, vector<128x384xbf16>, vector<8x384xf32> -> vector<8x384xf32>
    %49 = vector.extract_strided_slice %48 {offsets = [0, 0], sizes = [8, 128], strides = [1, 1]} : vector<8x384xf32> to vector<8x128xf32>
    %50 = vector.extract_strided_slice %48 {offsets = [0, 128], sizes = [8, 128], strides = [1, 1]} : vector<8x384xf32> to vector<8x128xf32>
    %51 = vector.extract_strided_slice %48 {offsets = [0, 256], sizes = [8, 128], strides = [1, 1]} : vector<8x384xf32> to vector<8x128xf32>
    %52 = vector.broadcast %4 : vector<1x128xf32> to vector<8x128xf32>
    %53 = arith.addf %51, %52 : vector<8x128xf32>
    %54 = arith.index_cast %c1_i32 : i32 to index
    %c0_15 = arith.constant 0 : index
    %c0_16 = arith.constant 0 : index
    %55 = vector.load %arg2[%54, %c0_15, %c0_16] : memref<8x8x384xbf16, #tpu.memory_space<vmem>>, vector<1x8x384xbf16>
    %56 = vector.shape_cast %55 : vector<1x8x384xbf16> to vector<8x384xbf16>
    %57 = vector.extract_strided_slice %56 {offsets = [0, 0], sizes = [8, 128], strides = [1, 1]} : vector<8x384xbf16> to vector<8x128xbf16>
    %58 = arith.extf %57 : vector<8x128xbf16> to vector<8x128xf32>
    %59 = arith.addf %58, %49 : vector<8x128xf32>
    %60 = arith.negf %59 : vector<8x128xf32>
    %61 = math.exp %60 : vector<8x128xf32>
    %cst_17 = arith.constant 1.000000e+00 : f32
    %62 = vector.broadcast %cst_17 : f32 to vector<8x128xf32>
    %63 = arith.addf %62, %61 : vector<8x128xf32>
    %64 = arith.divf %62, %63 : vector<8x128xf32>
    %65 = vector.extract_strided_slice %56 {offsets = [0, 128], sizes = [8, 128], strides = [1, 1]} : vector<8x384xbf16> to vector<8x128xbf16>
    %66 = arith.extf %65 : vector<8x128xbf16> to vector<8x128xf32>
    %67 = arith.addf %66, %50 : vector<8x128xf32>
    %68 = arith.negf %67 : vector<8x128xf32>
    %69 = math.exp %68 : vector<8x128xf32>
    %cst_18 = arith.constant 1.000000e+00 : f32
    %70 = vector.broadcast %cst_18 : f32 to vector<8x128xf32>
    %71 = arith.addf %70, %69 : vector<8x128xf32>
    %72 = arith.divf %70, %71 : vector<8x128xf32>
    %73 = vector.extract_strided_slice %56 {offsets = [0, 256], sizes = [8, 128], strides = [1, 1]} : vector<8x384xbf16> to vector<8x128xbf16>
    %74 = arith.mulf %64, %53 : vector<8x128xf32>
    %75 = arith.extf %73 : vector<8x128xbf16> to vector<8x128xf32>
    %76 = arith.addf %75, %74 : vector<8x128xf32>
    %77 = math.tanh %76 : vector<8x128xf32>
    %cst_19 = arith.constant 1.000000e+00 : f32
    %78 = vector.broadcast %cst_19 : f32 to vector<8x128xf32>
    %79 = arith.subf %78, %72 : vector<8x128xf32>
    %80 = arith.mulf %79, %77 : vector<8x128xf32>
    %81 = arith.mulf %72, %41 : vector<8x128xf32>
    %82 = arith.addf %80, %81 : vector<8x128xf32>
    %83 = arith.truncf %82 : vector<8x128xf32> to vector<8x128xbf16>
    %84 = arith.index_cast %c1_i32 : i32 to index
    %c0_20 = arith.constant 0 : index
    %c0_21 = arith.constant 0 : index
    %85 = vector.load %arg6[%84, %c0_20, %c0_21] : memref<8x8x128xbf16, #tpu.memory_space<vmem>>, vector<1x8x128xbf16>
    %86 = vector.shape_cast %85 : vector<1x8x128xbf16> to vector<8x128xbf16>
    %87 = vector.shape_cast %83 : vector<8x128xbf16> to vector<1x8x128xbf16>
    tpu.vector_store %arg6[%84, %c0_20, %c0_21], %87 {strides = array<i32>} : memref<8x8x128xbf16, #tpu.memory_space<vmem>>, vector<1x8x128xbf16>,
    %c2_i32 = arith.constant 2 : i32
    %88 = arith.truncf %82 : vector<8x128xf32> to vector<8x128xbf16>
    %cst_22 = arith.constant dense<0.000000e+00> : vector<8x384xf32>
    %89 = tpu.matmul %88, %3, %cst_22 {dimension_numbers = #tpu.dot_dimension_numbers<[1], [0], [0], [1], [0, 0, 1, 1], [], []>} : vector<8x128xbf16>, vector<128x384xbf16>, vector<8x384xf32> -> vector<8x384xf32>
    %90 = vector.extract_strided_slice %89 {offsets = [0, 0], sizes = [8, 128], strides = [1, 1]} : vector<8x384xf32> to vector<8x128xf32>
    %91 = vector.extract_strided_slice %89 {offsets = [0, 128], sizes = [8, 128], strides = [1, 1]} : vector<8x384xf32> to vector<8x128xf32>
    %92 = vector.extract_strided_slice %89 {offsets = [0, 256], sizes = [8, 128], strides = [1, 1]} : vector<8x384xf32> to vector<8x128xf32>
    %93 = vector.broadcast %4 : vector<1x128xf32> to vector<8x128xf32>
    %94 = arith.addf %92, %93 : vector<8x128xf32>
    %95 = arith.index_cast %c2_i32 : i32 to index
    %c0_23 = arith.constant 0 : index
    %c0_24 = arith.constant 0 : index
    %96 = vector.load %arg2[%95, %c0_23, %c0_24] : memref<8x8x384xbf16, #tpu.memory_space<vmem>>, vector<1x8x384xbf16>
    %97 = vector.shape_cast %96 : vector<1x8x384xbf16> to vector<8x384xbf16>
    %98 = vector.extract_strided_slice %97 {offsets = [0, 0], sizes = [8, 128], strides = [1, 1]} : vector<8x384xbf16> to vector<8x128xbf16>
    %99 = arith.extf %98 : vector<8x128xbf16> to vector<8x128xf32>
    %100 = arith.addf %99, %90 : vector<8x128xf32>
    %101 = arith.negf %100 : vector<8x128xf32>
    %102 = math.exp %101 : vector<8x128xf32>
    %cst_25 = arith.constant 1.000000e+00 : f32
    %103 = vector.broadcast %cst_25 : f32 to vector<8x128xf32>
    %104 = arith.addf %103, %102 : vector<8x128xf32>
    %105 = arith.divf %103, %104 : vector<8x128xf32>
    %106 = vector.extract_strided_slice %97 {offsets = [0, 128], sizes = [8, 128], strides = [1, 1]} : vector<8x384xbf16> to vector<8x128xbf16>
    %107 = arith.extf %106 : vector<8x128xbf16> to vector<8x128xf32>
    %108 = arith.addf %107, %91 : vector<8x128xf32>
    %109 = arith.negf %108 : vector<8x128xf32>
    %110 = math.exp %109 : vector<8x128xf32>
    %cst_26 = arith.constant 1.000000e+00 : f32
    %111 = vector.broadcast %cst_26 : f32 to vector<8x128xf32>
    %112 = arith.addf %111, %110 : vector<8x128xf32>
    %113 = arith.divf %111, %112 : vector<8x128xf32>
    %114 = vector.extract_strided_slice %97 {offsets = [0, 256], sizes = [8, 128], strides = [1, 1]} : vector<8x384xbf16> to vector<8x128xbf16>
    %115 = arith.mulf %105, %94 : vector<8x128xf32>
    %116 = arith.extf %114 : vector<8x128xbf16> to vector<8x128xf32>
    %117 = arith.addf %116, %115 : vector<8x128xf32>
    %118 = math.tanh %117 : vector<8x128xf32>
    %cst_27 = arith.constant 1.000000e+00 : f32
    %119 = vector.broadcast %cst_27 : f32 to vector<8x128xf32>
    %120 = arith.subf %119, %113 : vector<8x128xf32>
    %121 = arith.mulf %120, %118 : vector<8x128xf32>
    %122 = arith.mulf %113, %82 : vector<8x128xf32>
    %123 = arith.addf %121, %122 : vector<8x128xf32>
    %124 = arith.truncf %123 : vector<8x128xf32> to vector<8x128xbf16>
    %125 = arith.index_cast %c2_i32 : i32 to index
    %c0_28 = arith.constant 0 : index
    %c0_29 = arith.constant 0 : index
    %126 = vector.load %arg6[%125, %c0_28, %c0_29] : memref<8x8x128xbf16, #tpu.memory_space<vmem>>, vector<1x8x128xbf16>
    %127 = vector.shape_cast %126 : vector<1x8x128xbf16> to vector<8x128xbf16>
    %128 = vector.shape_cast %124 : vector<8x128xbf16> to vector<1x8x128xbf16>
    tpu.vector_store %arg6[%125, %c0_28, %c0_29], %128 {strides = array<i32>} : memref<8x8x128xbf16, #tpu.memory_space<vmem>>, vector<1x8x128xbf16>,
    %c3_i32 = arith.constant 3 : i32
    %129 = arith.truncf %123 : vector<8x128xf32> to vector<8x128xbf16>
    %cst_30 = arith.constant dense<0.000000e+00> : vector<8x384xf32>
    %130 = tpu.matmul %129, %3, %cst_30 {dimension_numbers = #tpu.dot_dimension_numbers<[1], [0], [0], [1], [0, 0, 1, 1], [], []>} : vector<8x128xbf16>, vector<128x384xbf16>, vector<8x384xf32> -> vector<8x384xf32>
    %131 = vector.extract_strided_slice %130 {offsets = [0, 0], sizes = [8, 128], strides = [1, 1]} : vector<8x384xf32> to vector<8x128xf32>
    %132 = vector.extract_strided_slice %130 {offsets = [0, 128], sizes = [8, 128], strides = [1, 1]} : vector<8x384xf32> to vector<8x128xf32>
    %133 = vector.extract_strided_slice %130 {offsets = [0, 256], sizes = [8, 128], strides = [1, 1]} : vector<8x384xf32> to vector<8x128xf32>
    %134 = vector.broadcast %4 : vector<1x128xf32> to vector<8x128xf32>
    %135 = arith.addf %133, %134 : vector<8x128xf32>
    %136 = arith.index_cast %c3_i32 : i32 to index
    %c0_31 = arith.constant 0 : index
    %c0_32 = arith.constant 0 : index
    %137 = vector.load %arg2[%136, %c0_31, %c0_32] : memref<8x8x384xbf16, #tpu.memory_space<vmem>>, vector<1x8x384xbf16>
    %138 = vector.shape_cast %137 : vector<1x8x384xbf16> to vector<8x384xbf16>
    %139 = vector.extract_strided_slice %138 {offsets = [0, 0], sizes = [8, 128], strides = [1, 1]} : vector<8x384xbf16> to vector<8x128xbf16>
    %140 = arith.extf %139 : vector<8x128xbf16> to vector<8x128xf32>
    %141 = arith.addf %140, %131 : vector<8x128xf32>
    %142 = arith.negf %141 : vector<8x128xf32>
    %143 = math.exp %142 : vector<8x128xf32>
    %cst_33 = arith.constant 1.000000e+00 : f32
    %144 = vector.broadcast %cst_33 : f32 to vector<8x128xf32>
    %145 = arith.addf %144, %143 : vector<8x128xf32>
    %146 = arith.divf %144, %145 : vector<8x128xf32>
    %147 = vector.extract_strided_slice %138 {offsets = [0, 128], sizes = [8, 128], strides = [1, 1]} : vector<8x384xbf16> to vector<8x128xbf16>
    %148 = arith.extf %147 : vector<8x128xbf16> to vector<8x128xf32>
    %149 = arith.addf %148, %132 : vector<8x128xf32>
    %150 = arith.negf %149 : vector<8x128xf32>
    %151 = math.exp %150 : vector<8x128xf32>
    %cst_34 = arith.constant 1.000000e+00 : f32
    %152 = vector.broadcast %cst_34 : f32 to vector<8x128xf32>
    %153 = arith.addf %152, %151 : vector<8x128xf32>
    %154 = arith.divf %152, %153 : vector<8x128xf32>
    %155 = vector.extract_strided_slice %138 {offsets = [0, 256], sizes = [8, 128], strides = [1, 1]} : vector<8x384xbf16> to vector<8x128xbf16>
    %156 = arith.mulf %146, %135 : vector<8x128xf32>
    %157 = arith.extf %155 : vector<8x128xbf16> to vector<8x128xf32>
    %158 = arith.addf %157, %156 : vector<8x128xf32>
    %159 = math.tanh %158 : vector<8x128xf32>
    %cst_35 = arith.constant 1.000000e+00 : f32
    %160 = vector.broadcast %cst_35 : f32 to vector<8x128xf32>
    %161 = arith.subf %160, %154 : vector<8x128xf32>
    %162 = arith.mulf %161, %159 : vector<8x128xf32>
    %163 = arith.mulf %154, %123 : vector<8x128xf32>
    %164 = arith.addf %162, %163 : vector<8x128xf32>
    %165 = arith.truncf %164 : vector<8x128xf32> to vector<8x128xbf16>
    %166 = arith.index_cast %c3_i32 : i32 to index
    %c0_36 = arith.constant 0 : index
    %c0_37 = arith.constant 0 : index
    %167 = vector.load %arg6[%166, %c0_36, %c0_37] : memref<8x8x128xbf16, #tpu.memory_space<vmem>>, vector<1x8x128xbf16>
    %168 = vector.shape_cast %167 : vector<1x8x128xbf16> to vector<8x128xbf16>
    %169 = vector.shape_cast %165 : vector<8x128xbf16> to vector<1x8x128xbf16>
    tpu.vector_store %arg6[%166, %c0_36, %c0_37], %169 {strides = array<i32>} : memref<8x8x128xbf16, #tpu.memory_space<vmem>>, vector<1x8x128xbf16>,
    %c4_i32 = arith.constant 4 : i32
    %170 = arith.truncf %164 : vector<8x128xf32> to vector<8x128xbf16>
    %cst_38 = arith.constant dense<0.000000e+00> : vector<8x384xf32>
    %171 = tpu.matmul %170, %3, %cst_38 {dimension_numbers = #tpu.dot_dimension_numbers<[1], [0], [0], [1], [0, 0, 1, 1], [], []>} : vector<8x128xbf16>, vector<128x384xbf16>, vector<8x384xf32> -> vector<8x384xf32>
    %172 = vector.extract_strided_slice %171 {offsets = [0, 0], sizes = [8, 128], strides = [1, 1]} : vector<8x384xf32> to vector<8x128xf32>
    %173 = vector.extract_strided_slice %171 {offsets = [0, 128], sizes = [8, 128], strides = [1, 1]} : vector<8x384xf32> to vector<8x128xf32>
    %174 = vector.extract_strided_slice %171 {offsets = [0, 256], sizes = [8, 128], strides = [1, 1]} : vector<8x384xf32> to vector<8x128xf32>
    %175 = vector.broadcast %4 : vector<1x128xf32> to vector<8x128xf32>
    %176 = arith.addf %174, %175 : vector<8x128xf32>
    %177 = arith.index_cast %c4_i32 : i32 to index
    %c0_39 = arith.constant 0 : index
    %c0_40 = arith.constant 0 : index
    %178 = vector.load %arg2[%177, %c0_39, %c0_40] : memref<8x8x384xbf16, #tpu.memory_space<vmem>>, vector<1x8x384xbf16>
    %179 = vector.shape_cast %178 : vector<1x8x384xbf16> to vector<8x384xbf16>
    %180 = vector.extract_strided_slice %179 {offsets = [0, 0], sizes = [8, 128], strides = [1, 1]} : vector<8x384xbf16> to vector<8x128xbf16>
    %181 = arith.extf %180 : vector<8x128xbf16> to vector<8x128xf32>
    %182 = arith.addf %181, %172 : vector<8x128xf32>
    %183 = arith.negf %182 : vector<8x128xf32>
    %184 = math.exp %183 : vector<8x128xf32>
    %cst_41 = arith.constant 1.000000e+00 : f32
    %185 = vector.broadcast %cst_41 : f32 to vector<8x128xf32>
    %186 = arith.addf %185, %184 : vector<8x128xf32>
    %187 = arith.divf %185, %186 : vector<8x128xf32>
    %188 = vector.extract_strided_slice %179 {offsets = [0, 128], sizes = [8, 128], strides = [1, 1]} : vector<8x384xbf16> to vector<8x128xbf16>
    %189 = arith.extf %188 : vector<8x128xbf16> to vector<8x128xf32>
    %190 = arith.addf %189, %173 : vector<8x128xf32>
    %191 = arith.negf %190 : vector<8x128xf32>
    %192 = math.exp %191 : vector<8x128xf32>
    %cst_42 = arith.constant 1.000000e+00 : f32
    %193 = vector.broadcast %cst_42 : f32 to vector<8x128xf32>
    %194 = arith.addf %193, %192 : vector<8x128xf32>
    %195 = arith.divf %193, %194 : vector<8x128xf32>
    %196 = vector.extract_strided_slice %179 {offsets = [0, 256], sizes = [8, 128], strides = [1, 1]} : vector<8x384xbf16> to vector<8x128xbf16>
    %197 = arith.mulf %187, %176 : vector<8x128xf32>
    %198 = arith.extf %196 : vector<8x128xbf16> to vector<8x128xf32>
    %199 = arith.addf %198, %197 : vector<8x128xf32>
    %200 = math.tanh %199 : vector<8x128xf32>
    %cst_43 = arith.constant 1.000000e+00 : f32
    %201 = vector.broadcast %cst_43 : f32 to vector<8x128xf32>
    %202 = arith.subf %201, %195 : vector<8x128xf32>
    %203 = arith.mulf %202, %200 : vector<8x128xf32>
    %204 = arith.mulf %195, %164 : vector<8x128xf32>
    %205 = arith.addf %203, %204 : vector<8x128xf32>
    %206 = arith.truncf %205 : vector<8x128xf32> to vector<8x128xbf16>
    %207 = arith.index_cast %c4_i32 : i32 to index
    %c0_44 = arith.constant 0 : index
    %c0_45 = arith.constant 0 : index
    %208 = vector.load %arg6[%207, %c0_44, %c0_45] : memref<8x8x128xbf16, #tpu.memory_space<vmem>>, vector<1x8x128xbf16>
    %209 = vector.shape_cast %208 : vector<1x8x128xbf16> to vector<8x128xbf16>
    %210 = vector.shape_cast %206 : vector<8x128xbf16> to vector<1x8x128xbf16>
    tpu.vector_store %arg6[%207, %c0_44, %c0_45], %210 {strides = array<i32>} : memref<8x8x128xbf16, #tpu.memory_space<vmem>>, vector<1x8x128xbf16>,
    %c5_i32 = arith.constant 5 : i32
    %211 = arith.truncf %205 : vector<8x128xf32> to vector<8x128xbf16>
    %cst_46 = arith.constant dense<0.000000e+00> : vector<8x384xf32>
    %212 = tpu.matmul %211, %3, %cst_46 {dimension_numbers = #tpu.dot_dimension_numbers<[1], [0], [0], [1], [0, 0, 1, 1], [], []>} : vector<8x128xbf16>, vector<128x384xbf16>, vector<8x384xf32> -> vector<8x384xf32>
    %213 = vector.extract_strided_slice %212 {offsets = [0, 0], sizes = [8, 128], strides = [1, 1]} : vector<8x384xf32> to vector<8x128xf32>
    %214 = vector.extract_strided_slice %212 {offsets = [0, 128], sizes = [8, 128], strides = [1, 1]} : vector<8x384xf32> to vector<8x128xf32>
    %215 = vector.extract_strided_slice %212 {offsets = [0, 256], sizes = [8, 128], strides = [1, 1]} : vector<8x384xf32> to vector<8x128xf32>
    %216 = vector.broadcast %4 : vector<1x128xf32> to vector<8x128xf32>
    %217 = arith.addf %215, %216 : vector<8x128xf32>
    %218 = arith.index_cast %c5_i32 : i32 to index
    %c0_47 = arith.constant 0 : index
    %c0_48 = arith.constant 0 : index
    %219 = vector.load %arg2[%218, %c0_47, %c0_48] : memref<8x8x384xbf16, #tpu.memory_space<vmem>>, vector<1x8x384xbf16>
    %220 = vector.shape_cast %219 : vector<1x8x384xbf16> to vector<8x384xbf16>
    %221 = vector.extract_strided_slice %220 {offsets = [0, 0], sizes = [8, 128], strides = [1, 1]} : vector<8x384xbf16> to vector<8x128xbf16>
    %222 = arith.extf %221 : vector<8x128xbf16> to vector<8x128xf32>
    %223 = arith.addf %222, %213 : vector<8x128xf32>
    %224 = arith.negf %223 : vector<8x128xf32>
    %225 = math.exp %224 : vector<8x128xf32>
    %cst_49 = arith.constant 1.000000e+00 : f32
    %226 = vector.broadcast %cst_49 : f32 to vector<8x128xf32>
    %227 = arith.addf %226, %225 : vector<8x128xf32>
    %228 = arith.divf %226, %227 : vector<8x128xf32>
    %229 = vector.extract_strided_slice %220 {offsets = [0, 128], sizes = [8, 128], strides = [1, 1]} : vector<8x384xbf16> to vector<8x128xbf16>
    %230 = arith.extf %229 : vector<8x128xbf16> to vector<8x128xf32>
    %231 = arith.addf %230, %214 : vector<8x128xf32>
    %232 = arith.negf %231 : vector<8x128xf32>
    %233 = math.exp %232 : vector<8x128xf32>
    %cst_50 = arith.constant 1.000000e+00 : f32
    %234 = vector.broadcast %cst_50 : f32 to vector<8x128xf32>
    %235 = arith.addf %234, %233 : vector<8x128xf32>
    %236 = arith.divf %234, %235 : vector<8x128xf32>
    %237 = vector.extract_strided_slice %220 {offsets = [0, 256], sizes = [8, 128], strides = [1, 1]} : vector<8x384xbf16> to vector<8x128xbf16>
    %238 = arith.mulf %228, %217 : vector<8x128xf32>
    %239 = arith.extf %237 : vector<8x128xbf16> to vector<8x128xf32>
    %240 = arith.addf %239, %238 : vector<8x128xf32>
    %241 = math.tanh %240 : vector<8x128xf32>
    %cst_51 = arith.constant 1.000000e+00 : f32
    %242 = vector.broadcast %cst_51 : f32 to vector<8x128xf32>
    %243 = arith.subf %242, %236 : vector<8x128xf32>
    %244 = arith.mulf %243, %241 : vector<8x128xf32>
    %245 = arith.mulf %236, %205 : vector<8x128xf32>
    %246 = arith.addf %244, %245 : vector<8x128xf32>
    %247 = arith.truncf %246 : vector<8x128xf32> to vector<8x128xbf16>
    %248 = arith.index_cast %c5_i32 : i32 to index
    %c0_52 = arith.constant 0 : index
    %c0_53 = arith.constant 0 : index
    %249 = vector.load %arg6[%248, %c0_52, %c0_53] : memref<8x8x128xbf16, #tpu.memory_space<vmem>>, vector<1x8x128xbf16>
    %250 = vector.shape_cast %249 : vector<1x8x128xbf16> to vector<8x128xbf16>
    %251 = vector.shape_cast %247 : vector<8x128xbf16> to vector<1x8x128xbf16>
    tpu.vector_store %arg6[%248, %c0_52, %c0_53], %251 {strides = array<i32>} : memref<8x8x128xbf16, #tpu.memory_space<vmem>>, vector<1x8x128xbf16>,
    %c6_i32 = arith.constant 6 : i32
    %252 = arith.truncf %246 : vector<8x128xf32> to vector<8x128xbf16>
    %cst_54 = arith.constant dense<0.000000e+00> : vector<8x384xf32>
    %253 = tpu.matmul %252, %3, %cst_54 {dimension_numbers = #tpu.dot_dimension_numbers<[1], [0], [0], [1], [0, 0, 1, 1], [], []>} : vector<8x128xbf16>, vector<128x384xbf16>, vector<8x384xf32> -> vector<8x384xf32>
    %254 = vector.extract_strided_slice %253 {offsets = [0, 0], sizes = [8, 128], strides = [1, 1]} : vector<8x384xf32> to vector<8x128xf32>
    %255 = vector.extract_strided_slice %253 {offsets = [0, 128], sizes = [8, 128], strides = [1, 1]} : vector<8x384xf32> to vector<8x128xf32>
    %256 = vector.extract_strided_slice %253 {offsets = [0, 256], sizes = [8, 128], strides = [1, 1]} : vector<8x384xf32> to vector<8x128xf32>
    %257 = vector.broadcast %4 : vector<1x128xf32> to vector<8x128xf32>
    %258 = arith.addf %256, %257 : vector<8x128xf32>
    %259 = arith.index_cast %c6_i32 : i32 to index
    %c0_55 = arith.constant 0 : index
    %c0_56 = arith.constant 0 : index
    %260 = vector.load %arg2[%259, %c0_55, %c0_56] : memref<8x8x384xbf16, #tpu.memory_space<vmem>>, vector<1x8x384xbf16>
    %261 = vector.shape_cast %260 : vector<1x8x384xbf16> to vector<8x384xbf16>
    %262 = vector.extract_strided_slice %261 {offsets = [0, 0], sizes = [8, 128], strides = [1, 1]} : vector<8x384xbf16> to vector<8x128xbf16>
    %263 = arith.extf %262 : vector<8x128xbf16> to vector<8x128xf32>
    %264 = arith.addf %263, %254 : vector<8x128xf32>
    %265 = arith.negf %264 : vector<8x128xf32>
    %266 = math.exp %265 : vector<8x128xf32>
    %cst_57 = arith.constant 1.000000e+00 : f32
    %267 = vector.broadcast %cst_57 : f32 to vector<8x128xf32>
    %268 = arith.addf %267, %266 : vector<8x128xf32>
    %269 = arith.divf %267, %268 : vector<8x128xf32>
    %270 = vector.extract_strided_slice %261 {offsets = [0, 128], sizes = [8, 128], strides = [1, 1]} : vector<8x384xbf16> to vector<8x128xbf16>
    %271 = arith.extf %270 : vector<8x128xbf16> to vector<8x128xf32>
    %272 = arith.addf %271, %255 : vector<8x128xf32>
    %273 = arith.negf %272 : vector<8x128xf32>
    %274 = math.exp %273 : vector<8x128xf32>
    %cst_58 = arith.constant 1.000000e+00 : f32
    %275 = vector.broadcast %cst_58 : f32 to vector<8x128xf32>
    %276 = arith.addf %275, %274 : vector<8x128xf32>
    %277 = arith.divf %275, %276 : vector<8x128xf32>
    %278 = vector.extract_strided_slice %261 {offsets = [0, 256], sizes = [8, 128], strides = [1, 1]} : vector<8x384xbf16> to vector<8x128xbf16>
    %279 = arith.mulf %269, %258 : vector<8x128xf32>
    %280 = arith.extf %278 : vector<8x128xbf16> to vector<8x128xf32>
    %281 = arith.addf %280, %279 : vector<8x128xf32>
    %282 = math.tanh %281 : vector<8x128xf32>
    %cst_59 = arith.constant 1.000000e+00 : f32
    %283 = vector.broadcast %cst_59 : f32 to vector<8x128xf32>
    %284 = arith.subf %283, %277 : vector<8x128xf32>
    %285 = arith.mulf %284, %282 : vector<8x128xf32>
    %286 = arith.mulf %277, %246 : vector<8x128xf32>
    %287 = arith.addf %285, %286 : vector<8x128xf32>
    %288 = arith.truncf %287 : vector<8x128xf32> to vector<8x128xbf16>
    %289 = arith.index_cast %c6_i32 : i32 to index
    %c0_60 = arith.constant 0 : index
    %c0_61 = arith.constant 0 : index
    %290 = vector.load %arg6[%289, %c0_60, %c0_61] : memref<8x8x128xbf16, #tpu.memory_space<vmem>>, vector<1x8x128xbf16>
    %291 = vector.shape_cast %290 : vector<1x8x128xbf16> to vector<8x128xbf16>
    %292 = vector.shape_cast %288 : vector<8x128xbf16> to vector<1x8x128xbf16>
    tpu.vector_store %arg6[%289, %c0_60, %c0_61], %292 {strides = array<i32>} : memref<8x8x128xbf16, #tpu.memory_space<vmem>>, vector<1x8x128xbf16>,
    %c7_i32 = arith.constant 7 : i32
    %293 = arith.truncf %287 : vector<8x128xf32> to vector<8x128xbf16>
    %cst_62 = arith.constant dense<0.000000e+00> : vector<8x384xf32>
    %294 = tpu.matmul %293, %3, %cst_62 {dimension_numbers = #tpu.dot_dimension_numbers<[1], [0], [0], [1], [0, 0, 1, 1], [], []>} : vector<8x128xbf16>, vector<128x384xbf16>, vector<8x384xf32> -> vector<8x384xf32>
    %295 = vector.extract_strided_slice %294 {offsets = [0, 0], sizes = [8, 128], strides = [1, 1]} : vector<8x384xf32> to vector<8x128xf32>
    %296 = vector.extract_strided_slice %294 {offsets = [0, 128], sizes = [8, 128], strides = [1, 1]} : vector<8x384xf32> to vector<8x128xf32>
    %297 = vector.extract_strided_slice %294 {offsets = [0, 256], sizes = [8, 128], strides = [1, 1]} : vector<8x384xf32> to vector<8x128xf32>
    %298 = vector.broadcast %4 : vector<1x128xf32> to vector<8x128xf32>
    %299 = arith.addf %297, %298 : vector<8x128xf32>
    %300 = arith.index_cast %c7_i32 : i32 to index
    %c0_63 = arith.constant 0 : index
    %c0_64 = arith.constant 0 : index
    %301 = vector.load %arg2[%300, %c0_63, %c0_64] : memref<8x8x384xbf16, #tpu.memory_space<vmem>>, vector<1x8x384xbf16>
    %302 = vector.shape_cast %301 : vector<1x8x384xbf16> to vector<8x384xbf16>
    %303 = vector.extract_strided_slice %302 {offsets = [0, 0], sizes = [8, 128], strides = [1, 1]} : vector<8x384xbf16> to vector<8x128xbf16>
    %304 = arith.extf %303 : vector<8x128xbf16> to vector<8x128xf32>
    %305 = arith.addf %304, %295 : vector<8x128xf32>
    %306 = arith.negf %305 : vector<8x128xf32>
    %307 = math.exp %306 : vector<8x128xf32>
    %cst_65 = arith.constant 1.000000e+00 : f32
    %308 = vector.broadcast %cst_65 : f32 to vector<8x128xf32>
    %309 = arith.addf %308, %307 : vector<8x128xf32>
    %310 = arith.divf %308, %309 : vector<8x128xf32>
    %311 = vector.extract_strided_slice %302 {offsets = [0, 128], sizes = [8, 128], strides = [1, 1]} : vector<8x384xbf16> to vector<8x128xbf16>
    %312 = arith.extf %311 : vector<8x128xbf16> to vector<8x128xf32>
    %313 = arith.addf %312, %296 : vector<8x128xf32>
    %314 = arith.negf %313 : vector<8x128xf32>
    %315 = math.exp %314 : vector<8x128xf32>
    %cst_66 = arith.constant 1.000000e+00 : f32
    %316 = vector.broadcast %cst_66 : f32 to vector<8x128xf32>
    %317 = arith.addf %316, %315 : vector<8x128xf32>
    %318 = arith.divf %316, %317 : vector<8x128xf32>
    %319 = vector.extract_strided_slice %302 {offsets = [0, 256], sizes = [8, 128], strides = [1, 1]} : vector<8x384xbf16> to vector<8x128xbf16>
    %320 = arith.mulf %310, %299 : vector<8x128xf32>
    %321 = arith.extf %319 : vector<8x128xbf16> to vector<8x128xf32>
    %322 = arith.addf %321, %320 : vector<8x128xf32>
    %323 = math.tanh %322 : vector<8x128xf32>
    %cst_67 = arith.constant 1.000000e+00 : f32
    %324 = vector.broadcast %cst_67 : f32 to vector<8x128xf32>
    %325 = arith.subf %324, %318 : vector<8x128xf32>
    %326 = arith.mulf %325, %323 : vector<8x128xf32>
    %327 = arith.mulf %318, %287 : vector<8x128xf32>
    %328 = arith.addf %326, %327 : vector<8x128xf32>
    %329 = arith.truncf %328 : vector<8x128xf32> to vector<8x128xbf16>
    %330 = arith.index_cast %c7_i32 : i32 to index
    %c0_68 = arith.constant 0 : index
    %c0_69 = arith.constant 0 : index
    %331 = vector.load %arg6[%330, %c0_68, %c0_69] : memref<8x8x128xbf16, #tpu.memory_space<vmem>>, vector<1x8x128xbf16>
    %332 = vector.shape_cast %331 : vector<1x8x128xbf16> to vector<8x128xbf16>
    %333 = vector.shape_cast %329 : vector<8x128xbf16> to vector<1x8x128xbf16>
    tpu.vector_store %arg6[%330, %c0_68, %c0_69], %333 {strides = array<i32>} : memref<8x8x128xbf16, #tpu.memory_space<vmem>>, vector<1x8x128xbf16>,
    %c8_i32 = arith.constant 8 : i32
    %c0_70 = arith.constant 0 : index
    %c0_71 = arith.constant 0 : index
    %334 = vector.load %arg7[%c0_70, %c0_71] : memref<8x128xf32, #tpu.memory_space<vmem>>, vector<8x128xf32>
    tpu.vector_store %arg7[%c0_70, %c0_71], %328 {strides = array<i32>} : memref<8x128xf32, #tpu.memory_space<vmem>>, vector<8x128xf32>,
    return
  }
  func.func @transform_0(%arg0: i32, %arg1: i32) -> (i32, i32, i32) {
    %c0_i32 = arith.constant 0 : i32
    %c0_i32_0 = arith.constant 0 : i32
    return %arg1, %arg0, %c0_i32 : i32, i32, i32
  }
  func.func @transform_1(%arg0: i32, %arg1: i32) -> (i32, i32) {
    %c0_i32 = arith.constant 0 : i32
    %c0_i32_0 = arith.constant 0 : i32
    return %arg0, %c0_i32 : i32, i32
  }
  func.func @transform_2(%arg0: i32, %arg1: i32) -> (i32, i32) {
    %c0_i32 = arith.constant 0 : i32
    %c0_i32_0 = arith.constant 0 : i32
    %c0_i32_1 = arith.constant 0 : i32
    return %c0_i32, %c0_i32_0 : i32, i32
  }
  func.func @transform_3(%arg0: i32, %arg1: i32) -> (i32, i32) {
    %c0_i32 = arith.constant 0 : i32
    %c0_i32_0 = arith.constant 0 : i32
    %c0_i32_1 = arith.constant 0 : i32
    return %c0_i32, %c0_i32_0 : i32, i32
  }
  func.func @transform_4(%arg0: i32, %arg1: i32) -> (i32, i32, i32) {
    %c0_i32 = arith.constant 0 : i32
    %c0_i32_0 = arith.constant 0 : i32
    return %arg1, %arg0, %c0_i32 : i32, i32, i32
  }
}

</mosaic_0001>

<bundles_post_ra>
// kernel: tpu_custom_call.1
= control target key start
LH: loop header
LB: loop body
LE: loop exit
PB: predicated region body
PF: predicated region fallthrough
CT: control target
= control target key end

     0   :  { %9 = vsyncpa [#allocation4], 0  ;;  %s2139_s0 = inlined_call_operand.hbm [shape: bf16[8,8,384], index: 0, kind: input, shape index: {}]   ;;  %s2140_s1 = inlined_call_operand.hbm [shape: f32[8,128], index: 1, kind: input, shape index: {}]   ;;  %s2141_s2 = inlined_call_operand.hbm [shape: bf16[128,384], index: 2, kind: input, shape index: {}]   ;;  %s2142_s3 = inlined_call_operand.vmem [shape: f32[1,128], index: 3, kind: input, shape index: {}]   ;;  %s2143_s4 = inlined_call_operand.hbm [shape: bf16[8,8,128], index: 4, kind: output, shape index: {}]  }
   0x1   :  { %10 = vsyncpa [#allocation7], 0 }
   0x2   :  { %11 = vsyncpa [#allocation5], 0  ;;  %s1670_s15 = smov [#allocation6]   ;;  %s1671_s17 = smov [#allocation3]  }
   0x3   :  { %s30_s16 = sshll.u32 %s1670_s15, 4  ;;  %s17_s18 = sshll.u32 %s1671_s17, 4  ;;  %s31_s16 = int_to_ptr.vmem [resolvable:$true] %s30_s16  ;;  %s1706_s18 = int_to_ptr.vmem [resolvable:$true] %s17_s18 }
   0x4   :  { %s1576_s21 = scalar_lea.hbm %s2140_s1, 128 }
   0x5   :  { %p1577_p0 = scmp.ne.s32.totalorder %s2140_s1, %s1576_s21  ;;  %p1580_p1 = scmp.lt.u32.totalorder %s1576_s21, %s2140_s1 }
   0x7   :  { %p1582_p2 = pnand %p1580_p1, %p1577_p0 }
   0x9   :  { %1585 = shalt.err (!%p1582_p2)
}
   0xa   :  { %s1586_s26 = scalar_lea.vmem %s31_s16, 128  ;;  %p1591_p4 = scmp.lt.s32.totalorder %s31_s16, %s31_s16 }
   0xb   :  { %p1587_p3 = scmp.ne.s32.totalorder %s31_s16, %s1586_s26  ;;  %p1592_p5 = scmp.lt.s32.totalorder %s1586_s26, %s1586_s26 }
   0xd   :  { %p1593_p6 = por %p1592_p5, %p1591_p4 }
   0xf   :  { %p1594_p7 = pnand %p1593_p6, %p1587_p3 }
  0x11   :  { %1597 = shalt.err (!%p1594_p7)
}
  0x12   :  { %33 = dma.hbm_to_vmem [thread:$0]  %s2140_s1, 128, %s31_s16, [#allocation7]  }
  0x13   :  { %s1598_s5 = scalar_lea.hbm %s2139_s0, 1536 }
  0x14   :  { %p1599_p8 = scmp.ne.s32.totalorder %s2139_s0, %s1598_s5  ;;  %p1602_p9 = scmp.lt.u32.totalorder %s1598_s5, %s2139_s0 }
  0x16   :  { %p1604_p10 = pnand %p1602_p9, %p1599_p8 }
  0x18   :  { %1607 = shalt.err (!%p1604_p10)
}
  0x19   :  { %s1608_s10 = scalar_lea.vmem %s1706_s18, 1536  ;;  %p1613_p12 = scmp.lt.s32.totalorder %s1706_s18, %s1706_s18 }
  0x1a   :  { %p1609_p11 = scmp.ne.s32.totalorder %s1706_s18, %s1608_s10  ;;  %p1614_p13 = scmp.lt.s32.totalorder %s1608_s10, %s1608_s10 }
  0x1c   :  { %p1615_p0 = por %p1614_p13, %p1613_p12 }
  0x1e   :  { %p1616_p1 = pnand %p1615_p0, %p1609_p11 }
  0x20   :  { %1619 = shalt.err (!%p1616_p1)
}
  0x21   :  { %s1672_s1 = smov 192   ;;  %s1673_s11 = smov 12  }
  0x22   :  { %23 = dma.hbm_to_vmem [thread:$0]  %s2139_s0, 1536, %s1706_s18, [#allocation4], %s1672_s1, %s1672_s1, %s1673_s11  }
  0x23   :  { %s1674_s14 = smov [#allocation8]   ;;  %s1620_s19 = scalar_lea.hbm %s2141_s2, 3072 }
  0x24   :  { %s39_s15 = sshll.u32 %s1674_s14, 4  ;;  %p1621_p2 = scmp.ne.s32.totalorder %s2141_s2, %s1620_s19  ;;  %s40_s15 = int_to_ptr.vmem [resolvable:$true] %s39_s15 }
  0x25   :  { %p1624_p3 = scmp.lt.u32.totalorder %s1620_s19, %s2141_s2 }
  0x27   :  { %p1626_p4 = pnand %p1624_p3, %p1621_p2 }
  0x29   :  { %1629 = shalt.err (!%p1626_p4)
}
  0x2a   :  { %s1630_s24 = scalar_lea.vmem %s40_s15, 3072  ;;  %p1635_p6 = scmp.lt.s32.totalorder %s40_s15, %s40_s15 }
  0x2b   :  { %p1631_p5 = scmp.ne.s32.totalorder %s40_s15, %s1630_s24  ;;  %p1636_p7 = scmp.lt.s32.totalorder %s1630_s24, %s1630_s24 }
  0x2d   :  { %p1637_p8 = por %p1636_p7, %p1635_p6 }
  0x2f   :  { %p1638_p9 = pnand %p1637_p8, %p1631_p5 }
  0x31   :  { %1641 = shalt.err (!%p1638_p9)
}
  0x32   :  { %45 = dma.hbm_to_vmem [thread:$0]  %s2141_s2, 3072, %s40_s15, [#allocation7], %s1672_s1, %s1672_s1, %s1673_s11  }
  0x33   :  { %1664 = dma.done.wait [#allocation4], 1536  }
  0x34   :  { %1665 = vsyncadd [#allocation4], 4294965760 }
  0x35   :  { %1666 = dma.done.wait [#allocation7], 3200  }
  0x36   :  { %1667 = vsyncadd [#allocation7], 4294964096  ;;  %v1675_v0 = vmov 0.0   ;;  %v1676_v1 = vmov 0   ;;  %vm1677_vm0 = vmmov 0   ;;  %v1817_v23 = vld [vmem:[#allocation6] sm:$0xff] }
  0x37   :  { %1283 = vmatprep.subr.bf16.mxu1 %v1675_v0  ;;  %259 = vmatprep.mubr.bf16.mxu0 %v1676_v1  ;;  %v1753_v2 = vld [vmem:[#allocation8 + $0x4] ss:$12 sps:$4 sm:$0xff]   ;;  %v1755_v3 = vld [vmem:[#allocation8] ss:$12 sps:$4 sm:$0xff]   ;;  %v1758_v4 = vld [vmem:[#allocation8 + $0x1c] ss:$12 sps:$4 sm:$0xff]   ;;  %v98_v25 = vpack.c.bf16 %v1817_v23, %v1817_v23 }
  0x38   :  { %1299 = vmatprep.mubr.msk.bf16.mxu1 %vm1677_vm0, %v1675_v0  ;;  %227 = vmatprep.subr.bf16.mxu0 %v1753_v2  ;;  %v1761_v5 = vld [vmem:[#allocation8 + $0x18] ss:$12 sps:$4 sm:$0xff]   ;;  %v1764_v6 = vld [vmem:[#allocation8 + $0x34] ss:$12 sps:$4 sm:$0xff]   ;;  %v1767_v7 = vld [vmem:[#allocation8 + $0x30] ss:$12 sps:$4 sm:$0xff]  }
  0x39   :  { %228 = vmatpush1.bf16.msra.mxu0 %v1755_v3  ;;  %v1770_v8 = vld [vmem:[#allocation8 + $0x4c] ss:$12 sps:$4 sm:$0xff]   ;;  %v1772_v9 = vld [vmem:[#allocation8 + $0x8] ss:$12 sps:$4 sm:$0xff]   ;;  %v1779_v11 = vld [vmem:[#allocation8 + $0x64] ss:$12 sps:$4 sm:$0xff]  }
  0x3a   :  { %229 = vmatprep.subr.bf16.mxu0 %v1758_v4  ;;  %v1775_v10 = vld [vmem:[#allocation8 + $0x48] ss:$12 sps:$4 sm:$0xff]   ;;  %1284 = vmatpush3.bf16.msra.mxu1 %v1772_v9  ;;  %v1782_v12 = vld [vmem:[#allocation8 + $0x20] ss:$12 sps:$4 sm:$0xff]   ;;  %v1788_v14 = vld [vmem:[#allocation8 + $0x38] ss:$12 sps:$4 sm:$0xff]  }
  0x3b   :  { %1285 = vmatprep.subr.bf16.mxu1 %v1675_v0  ;;  %v1784_v13 = vld [vmem:[#allocation8 + $0x60] ss:$12 sps:$4 sm:$0xff]   ;;  %v1791_v15 = vld [vmem:[#allocation8 + $0x7c] ss:$12 sps:$4 sm:$0xff]   ;;  %v1795_v16 = vld [vmem:[#allocation8 + $0x78] ss:$12 sps:$4 sm:$0xff]  }
  0x3c   :  { %v1798_v17 = vld [vmem:[#allocation8 + $0x50] ss:$12 sps:$4 sm:$0xff]   ;;  %v1801_v18 = vld [vmem:[#allocation8 + $0x94] ss:$12 sps:$4 sm:$0xff]   ;;  %v1811_v21 = vld [vmem:[#allocation8 + $0xac] ss:$12 sps:$4 sm:$0xff]  }
  0x3d   :  { %230 = vmatpush1.bf16.msra.mxu0 %v1761_v5  ;;  %v1805_v19 = vld [vmem:[#allocation8 + $0x90] ss:$12 sps:$4 sm:$0xff]   ;;  %v1808_v20 = vld [vmem:[#allocation8 + $0x68] ss:$12 sps:$4 sm:$0xff]   ;;  %v1820_v24 = vld [vmem:[#allocation8 + $0x80] ss:$12 sps:$4 sm:$0xff]  }
  0x3e   :  { %231 = vmatprep.subr.bf16.mxu0 %v1764_v6  ;;  %1286 = vmatpush3.bf16.msra.mxu1 %v1782_v12  ;;  %v1815_v22 = vld [vmem:[#allocation8 + $0xa8] ss:$12 sps:$4 sm:$0xff]   ;;  %v1828_v26 = vld [vmem:[#allocation8 + $0x98] ss:$12 sps:$4 sm:$0xff]   ;;  %v1833_v27 = vld [vmem:[#allocation8 + $0xb0] ss:$12 sps:$4 sm:$0xff]  }
  0x3f   :  { %1287 = vmatprep.subr.bf16.mxu1 %v1675_v0  ;;  %v315_v28 = vld [vmem:[#allocation3] sm:$0xff]  ;;  %v1878_v48 = vld [vmem:[#allocation3 + $0x8] ss:$12 sps:$4 sm:$0xff]   ;;  %v429_v62 = vld [vmem:[#allocation3 + $0xc] sm:$0xff] }
  0x40   :  { %v326_v29 = vrot.slane %v315_v28, 4  ;;  %v317_v30 = vunpack.c.l.bf16 %v315_v28  ;;  %v1876_v47 = vld [vmem:[%s2142_s3] ss:$0 sm:$0xff]  ;;  %v337_v51 = vunpack.c.l.bf16 %v1878_v48  ;;  %v440_v63 = vrot.slane %v429_v62, 4  ;;  %s1678_s3 = smov [#allocation9]  }
  0x41   :  { %232 = vmatpush1.bf16.msra.mxu0 %v1767_v7  ;;  %s1157_s26 = sshll.u32 %s1678_s3, 4  ;;  %s1158_s26 = int_to_ptr.vmem [resolvable:$true] %s1157_s26 }
  0x42   :  { %233 = vmatprep.subr.bf16.mxu0 %v1770_v8  ;;  %1288 = vmatpush3.bf16.msra.mxu1 %v1788_v14  ;;  %v328_v32 = vunpack.c.l.bf16 %v326_v29  ;;  %v442_v29 = vunpack.c.l.bf16 %v440_v63  ;;  %s1642_s27 = scalar_lea.vmem %s1158_s26, 512  ;;  %p1647_p11 = scmp.lt.s32.totalorder %s1158_s26, %s1158_s26 }
  0x43   :  { %1289 = vmatprep.subr.bf16.mxu1 %v1675_v0  ;;  %p1643_p10 = scmp.ne.s32.totalorder %s1158_s26, %s1642_s27  ;;  %p1648_p12 = scmp.lt.s32.totalorder %s1642_s27, %s1642_s27 }
  0x45   :  { %234 = vmatpush1.bf16.msra.mxu0 %v1775_v10  ;;  %p1649_p13 = por %p1648_p12, %p1647_p11 }
  0x46   :  { %235 = vmatprep.subr.bf16.mxu0 %v1779_v11  ;;  %1290 = vmatpush3.bf16.msra.mxu1 %v1798_v17 }
  0x47   :  { %1291 = vmatprep.subr.bf16.mxu1 %v1675_v0  ;;  %p1650_p0 = pnand %p1649_p13, %p1643_p10 }
  0x49   :  { %236 = vmatpush1.bf16.msra.mxu0 %v1784_v13 }
  0x4a   :  { %237 = vmatprep.subr.bf16.mxu0 %v1791_v15  ;;  %1292 = vmatpush3.bf16.msra.mxu1 %v1808_v20 }
  0x4b   :  { %1293 = vmatprep.subr.bf16.mxu1 %v1675_v0 }
  0x4d   :  { %238 = vmatpush1.bf16.msra.mxu0 %v1795_v16 }
  0x4e   :  { %239 = vmatprep.subr.bf16.mxu0 %v1801_v18  ;;  %1294 = vmatpush3.bf16.msra.mxu1 %v1820_v24 }
  0x4f   :  { %1295 = vmatprep.subr.bf16.mxu1 %v1675_v0 }
  0x51   :  { %240 = vmatpush1.bf16.msra.mxu0 %v1805_v19 }
  0x52   :  { %241 = vmatprep.subr.bf16.mxu0 %v1811_v21  ;;  %1296 = vmatpush3.bf16.msra.mxu1 %v1828_v26 }
  0x53   :  { %1297 = vmatprep.subr.bf16.mxu1 %v1675_v0 }
  0x55   :  { %242 = vmatpush1.bf16.msra.mxu0 %v1815_v22 }
  0x56   :  { %346 = vmatprep.subr.bf16.mxu0 %v1753_v2  ;;  %1298 = vmatpush3.bf16.msra.mxu1 %v1833_v27 }
  0x57   :  { %1303 = vmatprep.subr.bf16.mxu1 %v1675_v0 }
  0x58   :  { %260 = vmatmul.mubr.bf16.vlgmr.msra.gmra.mrb[0].mxu0 %v98_v25 }
  0x59   :  { %347 = vmatpush1.bf16.msra.mxu0 %v1755_v3  ;;  %378 = vmatprep.mubr.bf16.mxu0 %v1676_v1 }
  0x5a   :  { %348 = vmatprep.subr.bf16.mxu0 %v1758_v4  ;;  %1300 = vmatmul.mubr.bf16.vlgmr.msra.gmra.mrb[0].mxu1 %v98_v25 }
  0x5b   :  { %1304 = vmatpush3.bf16.msra.mxu1 %v1772_v9  ;;  %1319 = vmatprep.mubr.msk.bf16.mxu1 %vm1677_vm0, %v1675_v0 }
  0x5c   :  { %1305 = vmatprep.subr.bf16.mxu1 %v1675_v0 }
  0x5d   :  { %349 = vmatpush1.bf16.msra.mxu0 %v1761_v5 }
  0x5e   :  { %350 = vmatprep.subr.bf16.mxu0 %v1764_v6 }
  0x5f   :  { %1306 = vmatpush3.bf16.msra.mxu1 %v1782_v12 }
  0x60   :  { %1307 = vmatprep.subr.bf16.mxu1 %v1675_v0 }
  0x61   :  { %351 = vmatpush1.bf16.msra.mxu0 %v1767_v7 }
  0x62   :  { %352 = vmatprep.subr.bf16.mxu0 %v1770_v8 }
  0x63   :  { %1308 = vmatpush3.bf16.msra.mxu1 %v1788_v14 }
  0x64   :  { %1309 = vmatprep.subr.bf16.mxu1 %v1675_v0 }
  0x65   :  { %353 = vmatpush1.bf16.msra.mxu0 %v1775_v10 }
  0x66   :  { %354 = vmatprep.subr.bf16.mxu0 %v1779_v11 }
  0x67   :  { %1310 = vmatpush3.bf16.msra.mxu1 %v1798_v17 }
  0x68   :  { %1311 = vmatprep.subr.bf16.mxu1 %v1675_v0 }
  0x69   :  { %355 = vmatpush1.bf16.msra.mxu0 %v1784_v13 }
  0x6a   :  { %356 = vmatprep.subr.bf16.mxu0 %v1791_v15 }
  0x6b   :  { %1312 = vmatpush3.bf16.msra.mxu1 %v1808_v20 }
  0x6c   :  { %1313 = vmatprep.subr.bf16.mxu1 %v1675_v0 }
  0x6d   :  { %357 = vmatpush1.bf16.msra.mxu0 %v1795_v16 }
  0x6e   :  { %358 = vmatprep.subr.bf16.mxu0 %v1801_v18 }
  0x6f   :  { %1314 = vmatpush3.bf16.msra.mxu1 %v1820_v24 }
  0x70   :  { %1315 = vmatprep.subr.bf16.mxu1 %v1675_v0 }
  0x71   :  { %359 = vmatpush1.bf16.msra.mxu0 %v1805_v19 }
  0x72   :  { %360 = vmatprep.subr.bf16.mxu0 %v1811_v21 }
  0x73   :  { %1316 = vmatpush3.bf16.msra.mxu1 %v1828_v26 }
  0x74   :  { %1317 = vmatprep.subr.bf16.mxu1 %v1675_v0 }
  0x75   :  { %361 = vmatpush1.bf16.msra.mxu0 %v1815_v22 }
  0x76   :  { %461 = vmatprep.subr.bf16.mxu0 %v1753_v2 }
  0x77   :  { %1318 = vmatpush3.bf16.msra.mxu1 %v1833_v27 }
  0x78   :  { %1323 = vmatprep.subr.bf16.mxu1 %v1675_v0 }
 0x12b   :  { %v261_v31 = vpop.f32.mrb[0].mxu0 }
 0x12c   :  { %v318_v33 = vadd.f32 %v317_v30, %v261_v31  ;;  %v263_v34 = vpop.f32.mrb[1].mxu0 }
 0x12d   :  { %v265_v35 = vpop.f32.mrb[2].mxu0  ;;  %v329_v38 = vadd.f32 %v328_v32, %v263_v34  ;;  %v302_v40 = vpop.f32.mrb[0].mxu1 }
 0x12e   :  { %v1195_v36 = vmul.f32 -1.442695, %v318_v33  ;;  %v266_v37 = vpop.f32.mrb[3].mxu0  ;;  %v1301_v41 = vpop.f32.mrb[1].mxu1  ;;  %v314_v50 = vadd.f32 %v1876_v47, %v302_v40 }
 0x12f   :  { %v1196_v39 = vmul.f32 -1.442695, %v329_v38  ;;  %v305_v42 = vpop.f32.mrb[2].mxu1 }
 0x130   :  { %1486 = vpow2.f32 %v1195_v36  ;;  %v1302_v43 = vpop.f32.mrb[3].mxu1 }
 0x131   :  { %1488 = vpow2.f32 %v1196_v39 }
 0x13a   :  { %v1487_v44 = vpop.eup %1486 }
 0x13b   :  { %v322_v45 = vadd.f32 1.0, %v1487_v44  ;;  %v1489_v46 = vpop.eup %1488 }
 0x13c   :  { %v333_v49 = vadd.f32 1.0, %v1489_v46 }
 0x13d   :  { %1490 = vrcp.f32 %v322_v45  ;;  %v451_v45 = vunpack.c.h.bf16 %v1878_v48  ;;  %v544_v48 = vld [vmem:[#allocation3 + $0x18] sm:$0xff] }
 0x13e   :  { %1492 = vrcp.f32 %v333_v49 }
 0x147   :  { %v1491_v52 = vpop.eup %1490 }
 0x148   :  { %v336_v53 = vmul.f32 %v1491_v52, %v314_v50  ;;  %v1493_v55 = vpop.eup %1492 }
 0x149   :  { %v340_v56 = vsub.f32 1.0, %v1493_v55  ;;  %v342_v59 = vmul.f32 %v1493_v55, %v1817_v23  ;;  %v431_v23 = vunpack.c.l.bf16 %v429_v62 }
 0x14a   :  { %v338_v54 = vadd.f32 %v337_v51, %v336_v53 }
 0x14c   :  { %1494 = vtanh.f32 %v338_v54 }
 0x156   :  { %v1495_v57 = vpop.eup %1494 }
 0x157   :  { %v341_v58 = vmul.f32 %v1495_v57, %v340_v56 }
 0x159   :  { %v1883_v60 = vadd.f32 %v342_v59, %v341_v58  ;;  %v555_v58 = vrot.slane %v544_v48, 4  ;;  %v546_v59 = vunpack.c.l.bf16 %v544_v48 }
 0x15b   :  { %v344_v61 = vpack.c.bf16 %v1883_v60, %v1883_v60  ;;  %v557_v62 = vunpack.c.l.bf16 %v555_v58 }
 0x15d   :  { %345 = vst [vmem:[#allocation9] sm:$0xf] %v344_v61  ;;  %379 = vmatmul.mubr.bf16.vlgmr.msra.gmra.mrb[4].mxu0 %v344_v61  ;;  %1320 = vmatmul.mubr.bf16.vlgmr.msra.gmra.mrb[4].mxu1 %v344_v61 }
 0x15e   :  { %462 = vmatpush1.bf16.msra.mxu0 %v1755_v3  ;;  %1324 = vmatpush3.bf16.msra.mxu1 %v1772_v9 }
 0x15f   :  { %463 = vmatprep.subr.bf16.mxu0 %v1758_v4  ;;  %1325 = vmatprep.subr.bf16.mxu1 %v1675_v0 }
 0x160   :  { %493 = vmatprep.mubr.bf16.mxu0 %v1676_v1  ;;  %1339 = vmatprep.mubr.msk.bf16.mxu1 %vm1677_vm0, %v1675_v0 }
 0x162   :  { %464 = vmatpush1.bf16.msra.mxu0 %v1761_v5  ;;  %1326 = vmatpush3.bf16.msra.mxu1 %v1782_v12 }
 0x163   :  { %465 = vmatprep.subr.bf16.mxu0 %v1764_v6  ;;  %1327 = vmatprep.subr.bf16.mxu1 %v1675_v0 }
 0x166   :  { %466 = vmatpush1.bf16.msra.mxu0 %v1767_v7  ;;  %1328 = vmatpush3.bf16.msra.mxu1 %v1788_v14 }
 0x167   :  { %467 = vmatprep.subr.bf16.mxu0 %v1770_v8  ;;  %1329 = vmatprep.subr.bf16.mxu1 %v1675_v0 }
 0x16a   :  { %468 = vmatpush1.bf16.msra.mxu0 %v1775_v10  ;;  %1330 = vmatpush3.bf16.msra.mxu1 %v1798_v17 }
 0x16b   :  { %469 = vmatprep.subr.bf16.mxu0 %v1779_v11  ;;  %1331 = vmatprep.subr.bf16.mxu1 %v1675_v0 }
 0x16e   :  { %470 = vmatpush1.bf16.msra.mxu0 %v1784_v13  ;;  %1332 = vmatpush3.bf16.msra.mxu1 %v1808_v20 }
 0x16f   :  { %471 = vmatprep.subr.bf16.mxu0 %v1791_v15  ;;  %1333 = vmatprep.subr.bf16.mxu1 %v1675_v0 }
 0x172   :  { %472 = vmatpush1.bf16.msra.mxu0 %v1795_v16  ;;  %1334 = vmatpush3.bf16.msra.mxu1 %v1820_v24 }
 0x173   :  { %473 = vmatprep.subr.bf16.mxu0 %v1801_v18  ;;  %1335 = vmatprep.subr.bf16.mxu1 %v1675_v0 }
 0x176   :  { %474 = vmatpush1.bf16.msra.mxu0 %v1805_v19  ;;  %1336 = vmatpush3.bf16.msra.mxu1 %v1828_v26 }
 0x177   :  { %475 = vmatprep.subr.bf16.mxu0 %v1811_v21  ;;  %1337 = vmatprep.subr.bf16.mxu1 %v1675_v0 }
 0x17a   :  { %476 = vmatpush1.bf16.msra.mxu0 %v1815_v22  ;;  %1338 = vmatpush3.bf16.msra.mxu1 %v1833_v27 }
 0x17b   :  { %576 = vmatprep.subr.bf16.mxu0 %v1753_v2  ;;  %1343 = vmatprep.subr.bf16.mxu1 %v1675_v0 }
 0x230   :  { %v380_v25 = vpop.f32.mrb[4].mxu0  ;;  %v421_v28 = vpop.f32.mrb[4].mxu1 }
 0x231   :  { %v432_v30 = vadd.f32 %v431_v23, %v380_v25  ;;  %v382_v31 = vpop.f32.mrb[5].mxu0  ;;  %v1321_v32 = vpop.f32.mrb[5].mxu1  ;;  %v427_v44 = vadd.f32 %v1876_v47, %v421_v28 }
 0x232   :  { %v384_v33 = vpop.f32.mrb[6].mxu0  ;;  %v424_v34 = vpop.f32.mrb[6].mxu1  ;;  %v443_v38 = vadd.f32 %v442_v29, %v382_v31 }
 0x233   :  { %v1197_v35 = vmul.f32 -1.442695, %v432_v30  ;;  %v385_v36 = vpop.f32.mrb[7].mxu0  ;;  %v1322_v37 = vpop.f32.mrb[7].mxu1 }
 0x234   :  { %v1198_v39 = vmul.f32 -1.442695, %v443_v38  ;;  %v1964_v38 = vld [vmem:[#allocation3 + $0x20] ss:$12 sps:$4 sm:$0xff]  }
 0x235   :  { %1496 = vpow2.f32 %v1197_v35 }
 0x236   :  { %1498 = vpow2.f32 %v1198_v39 }
 0x23f   :  { %v1497_v40 = vpop.eup %1496 }
 0x240   :  { %v436_v41 = vadd.f32 1.0, %v1497_v40  ;;  %v1499_v42 = vpop.eup %1498 }
 0x241   :  { %v447_v43 = vadd.f32 1.0, %v1499_v42 }
 0x242   :  { %1500 = vrcp.f32 %v436_v41  ;;  %v566_v41 = vunpack.c.l.bf16 %v1964_v38 }
 0x243   :  { %1502 = vrcp.f32 %v447_v43 }
 0x24c   :  { %v1501_v46 = vpop.eup %1500 }
 0x24d   :  { %v450_v49 = vmul.f32 %v1501_v46, %v427_v44  ;;  %v1503_v51 = vpop.eup %1502 }
 0x24e   :  { %v454_v52 = vsub.f32 1.0, %v1503_v51  ;;  %v456_v55 = vmul.f32 %v1503_v51, %v1883_v60 }
 0x24f   :  { %v452_v50 = vadd.f32 %v451_v45, %v450_v49 }
 0x251   :  { %1504 = vtanh.f32 %v452_v50 }
 0x25b   :  { %v1505_v53 = vpop.eup %1504 }
 0x25c   :  { %v455_v54 = vmul.f32 %v1505_v53, %v454_v52 }
 0x25e   :  { %v1925_v56 = vadd.f32 %v456_v55, %v455_v54  ;;  %v659_v54 = vld [vmem:[#allocation3 + $0x24] sm:$0xff] }
 0x25f   :  { %v670_v55 = vrot.slane %v659_v54, 4 }
 0x260   :  { %v458_v57 = vpack.c.bf16 %v1925_v56, %v1925_v56 }
 0x261   :  { %v672_v58 = vunpack.c.l.bf16 %v670_v55 }
 0x262   :  { %460 = vst [vmem:[#allocation9 + $0x4] sm:$0xf] %v458_v57  ;;  %494 = vmatmul.mubr.bf16.vlgmr.msra.gmra.mrb[8].mxu0 %v458_v57  ;;  %1340 = vmatmul.mubr.bf16.vlgmr.msra.gmra.mrb[8].mxu1 %v458_v57 }
 0x263   :  { %577 = vmatpush1.bf16.msra.mxu0 %v1755_v3  ;;  %1344 = vmatpush3.bf16.msra.mxu1 %v1772_v9 }
 0x264   :  { %578 = vmatprep.subr.bf16.mxu0 %v1758_v4  ;;  %1345 = vmatprep.subr.bf16.mxu1 %v1675_v0 }
 0x265   :  { %608 = vmatprep.mubr.bf16.mxu0 %v1676_v1  ;;  %1359 = vmatprep.mubr.msk.bf16.mxu1 %vm1677_vm0, %v1675_v0 }
 0x267   :  { %579 = vmatpush1.bf16.msra.mxu0 %v1761_v5  ;;  %1346 = vmatpush3.bf16.msra.mxu1 %v1782_v12 }
 0x268   :  { %580 = vmatprep.subr.bf16.mxu0 %v1764_v6  ;;  %1347 = vmatprep.subr.bf16.mxu1 %v1675_v0 }
 0x26b   :  { %581 = vmatpush1.bf16.msra.mxu0 %v1767_v7  ;;  %1348 = vmatpush3.bf16.msra.mxu1 %v1788_v14 }
 0x26c   :  { %582 = vmatprep.subr.bf16.mxu0 %v1770_v8  ;;  %1349 = vmatprep.subr.bf16.mxu1 %v1675_v0 }
 0x26f   :  { %583 = vmatpush1.bf16.msra.mxu0 %v1775_v10  ;;  %1350 = vmatpush3.bf16.msra.mxu1 %v1798_v17 }
 0x270   :  { %584 = vmatprep.subr.bf16.mxu0 %v1779_v11  ;;  %1351 = vmatprep.subr.bf16.mxu1 %v1675_v0 }
 0x273   :  { %585 = vmatpush1.bf16.msra.mxu0 %v1784_v13  ;;  %1352 = vmatpush3.bf16.msra.mxu1 %v1808_v20 }
 0x274   :  { %586 = vmatprep.subr.bf16.mxu0 %v1791_v15  ;;  %1353 = vmatprep.subr.bf16.mxu1 %v1675_v0 }
 0x277   :  { %587 = vmatpush1.bf16.msra.mxu0 %v1795_v16  ;;  %1354 = vmatpush3.bf16.msra.mxu1 %v1820_v24 }
 0x278   :  { %588 = vmatprep.subr.bf16.mxu0 %v1801_v18  ;;  %1355 = vmatprep.subr.bf16.mxu1 %v1675_v0 }
 0x27b   :  { %589 = vmatpush1.bf16.msra.mxu0 %v1805_v19  ;;  %1356 = vmatpush3.bf16.msra.mxu1 %v1828_v26 }
 0x27c   :  { %590 = vmatprep.subr.bf16.mxu0 %v1811_v21  ;;  %1357 = vmatprep.subr.bf16.mxu1 %v1675_v0 }
 0x27f   :  { %591 = vmatpush1.bf16.msra.mxu0 %v1815_v22  ;;  %1358 = vmatpush3.bf16.msra.mxu1 %v1833_v27 }
 0x280   :  { %691 = vmatprep.subr.bf16.mxu0 %v1753_v2  ;;  %1363 = vmatprep.subr.bf16.mxu1 %v1675_v0 }
 0x335   :  { %v495_v60 = vpop.f32.mrb[8].mxu0  ;;  %v536_v61 = vpop.f32.mrb[8].mxu1 }
 0x336   :  { %v547_v63 = vadd.f32 %v546_v59, %v495_v60  ;;  %v497_v23 = vpop.f32.mrb[9].mxu0  ;;  %v1341_v25 = vpop.f32.mrb[9].mxu1  ;;  %v542_v40 = vadd.f32 %v1876_v47, %v536_v61 }
 0x337   :  { %v499_v28 = vpop.f32.mrb[10].mxu0  ;;  %v539_v29 = vpop.f32.mrb[10].mxu1  ;;  %v558_v33 = vadd.f32 %v557_v62, %v497_v23 }
 0x338   :  { %v1199_v30 = vmul.f32 -1.442695, %v547_v63  ;;  %v500_v31 = vpop.f32.mrb[11].mxu0  ;;  %v1342_v32 = vpop.f32.mrb[11].mxu1 }
 0x339   :  { %v1200_v34 = vmul.f32 -1.442695, %v558_v33 }
 0x33a   :  { %1506 = vpow2.f32 %v1199_v30 }
 0x33b   :  { %1508 = vpow2.f32 %v1200_v34 }
 0x344   :  { %v1507_v35 = vpop.eup %1506 }
 0x345   :  { %v551_v36 = vadd.f32 1.0, %v1507_v35  ;;  %v1509_v37 = vpop.eup %1508 }
 0x346   :  { %v562_v39 = vadd.f32 1.0, %v1509_v37 }
 0x347   :  { %1510 = vrcp.f32 %v551_v36  ;;  %v681_v36 = vunpack.c.h.bf16 %v1964_v38  ;;  %v774_v38 = vld [vmem:[#allocation3 + $0x30] sm:$0xff] }
 0x348   :  { %1512 = vrcp.f32 %v562_v39 }
 0x351   :  { %v1511_v42 = vpop.eup %1510 }
 0x352   :  { %v565_v43 = vmul.f32 %v1511_v42, %v542_v40  ;;  %v1513_v45 = vpop.eup %1512 }
 0x353   :  { %v569_v46 = vsub.f32 1.0, %v1513_v45  ;;  %v571_v51 = vmul.f32 %v1513_v45, %v1925_v56  ;;  %v661_v56 = vunpack.c.l.bf16 %v659_v54 }
 0x354   :  { %v567_v44 = vadd.f32 %v566_v41, %v565_v43 }
 0x356   :  { %1514 = vtanh.f32 %v567_v44 }
 0x360   :  { %v1515_v49 = vpop.eup %1514 }
 0x361   :  { %v570_v50 = vmul.f32 %v1515_v49, %v569_v46 }
 0x363   :  { %v1969_v52 = vadd.f32 %v571_v51, %v570_v50  ;;  %v785_v50 = vrot.slane %v774_v38, 4  ;;  %v776_v51 = vunpack.c.l.bf16 %v774_v38 }
 0x365   :  { %v573_v53 = vpack.c.bf16 %v1969_v52, %v1969_v52  ;;  %v787_v54 = vunpack.c.l.bf16 %v785_v50 }
 0x367   :  { %575 = vst [vmem:[#allocation9 + $0x8] sm:$0xf] %v573_v53  ;;  %609 = vmatmul.mubr.bf16.vlgmr.msra.gmra.mrb[12].mxu0 %v573_v53  ;;  %1360 = vmatmul.mubr.bf16.vlgmr.msra.gmra.mrb[12].mxu1 %v573_v53 }
 0x368   :  { %692 = vmatpush1.bf16.msra.mxu0 %v1755_v3  ;;  %1364 = vmatpush3.bf16.msra.mxu1 %v1772_v9 }
 0x369   :  { %693 = vmatprep.subr.bf16.mxu0 %v1758_v4  ;;  %1365 = vmatprep.subr.bf16.mxu1 %v1675_v0 }
 0x36a   :  { %723 = vmatprep.mubr.bf16.mxu0 %v1676_v1  ;;  %1379 = vmatprep.mubr.msk.bf16.mxu1 %vm1677_vm0, %v1675_v0 }
 0x36c   :  { %694 = vmatpush1.bf16.msra.mxu0 %v1761_v5  ;;  %1366 = vmatpush3.bf16.msra.mxu1 %v1782_v12 }
 0x36d   :  { %695 = vmatprep.subr.bf16.mxu0 %v1764_v6  ;;  %1367 = vmatprep.subr.bf16.mxu1 %v1675_v0 }
 0x370   :  { %696 = vmatpush1.bf16.msra.mxu0 %v1767_v7  ;;  %1368 = vmatpush3.bf16.msra.mxu1 %v1788_v14 }
 0x371   :  { %697 = vmatprep.subr.bf16.mxu0 %v1770_v8  ;;  %1369 = vmatprep.subr.bf16.mxu1 %v1675_v0 }
 0x374   :  { %698 = vmatpush1.bf16.msra.mxu0 %v1775_v10  ;;  %1370 = vmatpush3.bf16.msra.mxu1 %v1798_v17 }
 0x375   :  { %699 = vmatprep.subr.bf16.mxu0 %v1779_v11  ;;  %1371 = vmatprep.subr.bf16.mxu1 %v1675_v0 }
 0x378   :  { %700 = vmatpush1.bf16.msra.mxu0 %v1784_v13  ;;  %1372 = vmatpush3.bf16.msra.mxu1 %v1808_v20 }
 0x379   :  { %701 = vmatprep.subr.bf16.mxu0 %v1791_v15  ;;  %1373 = vmatprep.subr.bf16.mxu1 %v1675_v0 }
 0x37c   :  { %702 = vmatpush1.bf16.msra.mxu0 %v1795_v16  ;;  %1374 = vmatpush3.bf16.msra.mxu1 %v1820_v24 }
 0x37d   :  { %703 = vmatprep.subr.bf16.mxu0 %v1801_v18  ;;  %1375 = vmatprep.subr.bf16.mxu1 %v1675_v0 }
 0x380   :  { %704 = vmatpush1.bf16.msra.mxu0 %v1805_v19  ;;  %1376 = vmatpush3.bf16.msra.mxu1 %v1828_v26 }
 0x381   :  { %705 = vmatprep.subr.bf16.mxu0 %v1811_v21  ;;  %1377 = vmatprep.subr.bf16.mxu1 %v1675_v0 }
 0x384   :  { %706 = vmatpush1.bf16.msra.mxu0 %v1815_v22  ;;  %1378 = vmatpush3.bf16.msra.mxu1 %v1833_v27 }
 0x385   :  { %806 = vmatprep.subr.bf16.mxu0 %v1753_v2  ;;  %1383 = vmatprep.subr.bf16.mxu1 %v1675_v0 }
 0x43a   :  { %v610_v57 = vpop.f32.mrb[12].mxu0  ;;  %v651_v48 = vpop.f32.mrb[12].mxu1 }
 0x43b   :  { %v662_v59 = vadd.f32 %v661_v56, %v610_v57  ;;  %v612_v60 = vpop.f32.mrb[13].mxu0  ;;  %v1361_v61 = vpop.f32.mrb[13].mxu1  ;;  %v657_v35 = vadd.f32 %v1876_v47, %v651_v48 }
 0x43c   :  { %v614_v62 = vpop.f32.mrb[14].mxu0  ;;  %v654_v63 = vpop.f32.mrb[14].mxu1  ;;  %v673_v29 = vadd.f32 %v672_v58, %v612_v60 }
 0x43d   :  { %v1201_v23 = vmul.f32 -1.442695, %v662_v59  ;;  %v615_v25 = vpop.f32.mrb[15].mxu0  ;;  %v1362_v28 = vpop.f32.mrb[15].mxu1 }
 0x43e   :  { %v1202_v30 = vmul.f32 -1.442695, %v673_v29  ;;  %v2050_v29 = vld [vmem:[#allocation3 + $0x38] ss:$12 sps:$4 sm:$0xff]  }
 0x43f   :  { %1516 = vpow2.f32 %v1201_v23 }
 0x440   :  { %1518 = vpow2.f32 %v1202_v30 }
 0x449   :  { %v1517_v31 = vpop.eup %1516 }
 0x44a   :  { %v666_v32 = vadd.f32 1.0, %v1517_v31  ;;  %v1519_v33 = vpop.eup %1518 }
 0x44b   :  { %v677_v34 = vadd.f32 1.0, %v1519_v33 }
 0x44c   :  { %1520 = vrcp.f32 %v666_v32  ;;  %v796_v32 = vunpack.c.l.bf16 %v2050_v29 }
 0x44d   :  { %1522 = vrcp.f32 %v677_v34 }
 0x456   :  { %v1521_v37 = vpop.eup %1520 }
 0x457   :  { %v680_v39 = vmul.f32 %v1521_v37, %v657_v35  ;;  %v1523_v41 = vpop.eup %1522 }
 0x458   :  { %v684_v42 = vsub.f32 1.0, %v1523_v41  ;;  %v686_v45 = vmul.f32 %v1523_v41, %v1969_v52 }
 0x459   :  { %v682_v40 = vadd.f32 %v681_v36, %v680_v39 }
 0x45b   :  { %1524 = vtanh.f32 %v682_v40 }
 0x465   :  { %v1525_v43 = vpop.eup %1524 }
 0x466   :  { %v685_v44 = vmul.f32 %v1525_v43, %v684_v42 }
 0x468   :  { %v2011_v46 = vadd.f32 %v686_v45, %v685_v44 }
 0x46a   :  { %v688_v49 = vpack.c.bf16 %v2011_v46, %v2011_v46 }
 0x46c   :  { %690 = vst [vmem:[#allocation9 + $0xc] sm:$0xf] %v688_v49  ;;  %724 = vmatmul.mubr.bf16.vlgmr.msra.gmra.mrb[16].mxu0 %v688_v49  ;;  %1380 = vmatmul.mubr.bf16.vlgmr.msra.gmra.mrb[16].mxu1 %v688_v49 }
 0x46d   :  { %807 = vmatpush1.bf16.msra.mxu0 %v1755_v3  ;;  %1384 = vmatpush3.bf16.msra.mxu1 %v1772_v9 }
 0x46e   :  { %808 = vmatprep.subr.bf16.mxu0 %v1758_v4  ;;  %1385 = vmatprep.subr.bf16.mxu1 %v1675_v0 }
 0x46f   :  { %838 = vmatprep.mubr.bf16.mxu0 %v1676_v1  ;;  %1399 = vmatprep.mubr.msk.bf16.mxu1 %vm1677_vm0, %v1675_v0 }
 0x471   :  { %809 = vmatpush1.bf16.msra.mxu0 %v1761_v5  ;;  %1386 = vmatpush3.bf16.msra.mxu1 %v1782_v12 }
 0x472   :  { %810 = vmatprep.subr.bf16.mxu0 %v1764_v6  ;;  %1387 = vmatprep.subr.bf16.mxu1 %v1675_v0 }
 0x475   :  { %811 = vmatpush1.bf16.msra.mxu0 %v1767_v7  ;;  %1388 = vmatpush3.bf16.msra.mxu1 %v1788_v14 }
 0x476   :  { %812 = vmatprep.subr.bf16.mxu0 %v1770_v8  ;;  %1389 = vmatprep.subr.bf16.mxu1 %v1675_v0 }
 0x479   :  { %813 = vmatpush1.bf16.msra.mxu0 %v1775_v10  ;;  %1390 = vmatpush3.bf16.msra.mxu1 %v1798_v17 }
 0x47a   :  { %814 = vmatprep.subr.bf16.mxu0 %v1779_v11  ;;  %1391 = vmatprep.subr.bf16.mxu1 %v1675_v0 }
 0x47d   :  { %815 = vmatpush1.bf16.msra.mxu0 %v1784_v13  ;;  %1392 = vmatpush3.bf16.msra.mxu1 %v1808_v20 }
 0x47e   :  { %816 = vmatprep.subr.bf16.mxu0 %v1791_v15  ;;  %1393 = vmatprep.subr.bf16.mxu1 %v1675_v0 }
 0x481   :  { %817 = vmatpush1.bf16.msra.mxu0 %v1795_v16  ;;  %1394 = vmatpush3.bf16.msra.mxu1 %v1820_v24 }
 0x482   :  { %818 = vmatprep.subr.bf16.mxu0 %v1801_v18  ;;  %1395 = vmatprep.subr.bf16.mxu1 %v1675_v0 }
 0x485   :  { %819 = vmatpush1.bf16.msra.mxu0 %v1805_v19  ;;  %1396 = vmatpush3.bf16.msra.mxu1 %v1828_v26 }
 0x486   :  { %820 = vmatprep.subr.bf16.mxu0 %v1811_v21  ;;  %1397 = vmatprep.subr.bf16.mxu1 %v1675_v0 }
 0x489   :  { %821 = vmatpush1.bf16.msra.mxu0 %v1815_v22  ;;  %1398 = vmatpush3.bf16.msra.mxu1 %v1833_v27 }
 0x48a   :  { %921 = vmatprep.subr.bf16.mxu0 %v1753_v2  ;;  %1403 = vmatprep.subr.bf16.mxu1 %v1675_v0 }
 0x53f   :  { %v725_v52 = vpop.f32.mrb[16].mxu0  ;;  %v766_v53 = vpop.f32.mrb[16].mxu1 }
 0x540   :  { %v777_v55 = vadd.f32 %v776_v51, %v725_v52  ;;  %v727_v56 = vpop.f32.mrb[17].mxu0  ;;  %v1381_v57 = vpop.f32.mrb[17].mxu1  ;;  %v772_v31 = vadd.f32 %v1876_v47, %v766_v53 }
 0x541   :  { %v729_v48 = vpop.f32.mrb[18].mxu0  ;;  %v769_v58 = vpop.f32.mrb[18].mxu1  ;;  %v788_v62 = vadd.f32 %v787_v54, %v727_v56 }
 0x542   :  { %v1203_v59 = vmul.f32 -1.442695, %v777_v55  ;;  %v730_v60 = vpop.f32.mrb[19].mxu0  ;;  %v1382_v61 = vpop.f32.mrb[19].mxu1  ;;  %v911_v55 = vunpack.c.h.bf16 %v2050_v29  ;;  %v1568_v29 = vld [vmem:[#allocation8 + $0x1c] ss:$12 sps:$4 sm:$0xff]  }
 0x543   :  { %v1204_v63 = vmul.f32 -1.442695, %v788_v62 }
 0x544   :  { %1526 = vpow2.f32 %v1203_v59 }
 0x545   :  { %1528 = vpow2.f32 %v1204_v63 }
 0x54e   :  { %v1527_v23 = vpop.eup %1526 }
 0x54f   :  { %v781_v25 = vadd.f32 1.0, %v1527_v23  ;;  %v1529_v28 = vpop.eup %1528 }
 0x550   :  { %v792_v30 = vadd.f32 1.0, %v1529_v28  ;;  %v1567_v28 = vld [vmem:[#allocation8 + $0x8] ss:$12 sps:$4 sm:$0xff]  }
 0x551   :  { %1530 = vrcp.f32 %v781_v25  ;;  %v1566_v25 = vld [vmem:[#allocation8] ss:$12 sps:$4 sm:$0xff]  }
 0x552   :  { %1532 = vrcp.f32 %v792_v30  ;;  %v1569_v30 = vld [vmem:[#allocation8 + $0x18] ss:$12 sps:$4 sm:$0xff]  }
 0x55b   :  { %v1531_v33 = vpop.eup %1530 }
 0x55c   :  { %v795_v34 = vmul.f32 %v1531_v33, %v772_v31  ;;  %v1533_v36 = vpop.eup %1532  ;;  %v1570_v31 = vld [vmem:[#allocation8 + $0x34] ss:$12 sps:$4 sm:$0xff]   ;;  %v1572_v33 = vld [vmem:[#allocation8 + $0x4c] ss:$12 sps:$4 sm:$0xff]  }
 0x55d   :  { %v799_v37 = vsub.f32 1.0, %v1533_v36  ;;  %v801_v41 = vmul.f32 %v1533_v36, %v2011_v46 }
 0x55e   :  { %v797_v35 = vadd.f32 %v796_v32, %v795_v34  ;;  %v1571_v32 = vld [vmem:[#allocation8 + $0x30] ss:$12 sps:$4 sm:$0xff]  }
 0x55f   :  { %v1574_v34 = vld [vmem:[#allocation8 + $0x64] ss:$12 sps:$4 sm:$0xff]  }
 0x560   :  { %1534 = vtanh.f32 %v797_v35 }
 0x56a   :  { %v1535_v39 = vpop.eup %1534 }
 0x56b   :  { %v800_v40 = vmul.f32 %v1535_v39, %v799_v37 }
 0x56d   :  { %v2055_v42 = vadd.f32 %v801_v41, %v800_v40 }
 0x56f   :  { %v803_v43 = vpack.c.bf16 %v2055_v42, %v2055_v42 }
 0x571   :  { %805 = vst [vmem:[#allocation9 + $0x10] sm:$0xf] %v803_v43  ;;  %839 = vmatmul.mubr.bf16.vlgmr.msra.gmra.mrb[20].mxu0 %v803_v43  ;;  %1400 = vmatmul.mubr.bf16.vlgmr.msra.gmra.mrb[20].mxu1 %v803_v43 }
 0x572   :  { %922 = vmatpush1.bf16.msra.mxu0 %v1755_v3  ;;  %1404 = vmatpush3.bf16.msra.mxu1 %v1772_v9  ;;  %v889_v3 = vld [vmem:[#allocation3 + $0x3c] sm:$0xff] }
 0x573   :  { %923 = vmatprep.subr.bf16.mxu0 %v1758_v4  ;;  %1405 = vmatprep.subr.bf16.mxu1 %v1675_v0  ;;  %v900_v4 = vrot.slane %v889_v3, 4 }
 0x574   :  { %953 = vmatprep.mubr.bf16.mxu0 %v1676_v1  ;;  %1419 = vmatprep.mubr.msk.bf16.mxu1 %vm1677_vm0, %v1675_v0 }
 0x576   :  { %924 = vmatpush1.bf16.msra.mxu0 %v1761_v5  ;;  %1406 = vmatpush3.bf16.msra.mxu1 %v1782_v12  ;;  %v891_v5 = vunpack.c.l.bf16 %v889_v3 }
 0x577   :  { %925 = vmatprep.subr.bf16.mxu0 %v1764_v6  ;;  %1407 = vmatprep.subr.bf16.mxu1 %v1675_v0 }
 0x57a   :  { %926 = vmatpush1.bf16.msra.mxu0 %v1767_v7  ;;  %1408 = vmatpush3.bf16.msra.mxu1 %v1788_v14 }
 0x57b   :  { %927 = vmatprep.subr.bf16.mxu0 %v1770_v8  ;;  %1409 = vmatprep.subr.bf16.mxu1 %v1675_v0  ;;  %v902_v8 = vunpack.c.l.bf16 %v900_v4 }
 0x57e   :  { %928 = vmatpush1.bf16.msra.mxu0 %v1775_v10  ;;  %1410 = vmatpush3.bf16.msra.mxu1 %v1798_v17 }
 0x57f   :  { %929 = vmatprep.subr.bf16.mxu0 %v1779_v11  ;;  %1411 = vmatprep.subr.bf16.mxu1 %v1675_v0 }
 0x582   :  { %930 = vmatpush1.bf16.msra.mxu0 %v1784_v13  ;;  %1412 = vmatpush3.bf16.msra.mxu1 %v1808_v20 }
 0x583   :  { %931 = vmatprep.subr.bf16.mxu0 %v1791_v15  ;;  %1413 = vmatprep.subr.bf16.mxu1 %v1675_v0 }
 0x586   :  { %932 = vmatpush1.bf16.msra.mxu0 %v1795_v16  ;;  %1414 = vmatpush3.bf16.msra.mxu1 %v1820_v24 }
 0x587   :  { %933 = vmatprep.subr.bf16.mxu0 %v1801_v18  ;;  %1415 = vmatprep.subr.bf16.mxu1 %v1675_v0 }
 0x58a   :  { %934 = vmatpush1.bf16.msra.mxu0 %v1805_v19  ;;  %1416 = vmatpush3.bf16.msra.mxu1 %v1828_v26 }
 0x58b   :  { %935 = vmatprep.subr.bf16.mxu0 %v1811_v21  ;;  %1417 = vmatprep.subr.bf16.mxu1 %v1675_v0 }
 0x58e   :  { %936 = vmatpush1.bf16.msra.mxu0 %v1815_v22  ;;  %1418 = vmatpush3.bf16.msra.mxu1 %v1833_v27 }
 0x58f   :  { %1036 = vmatprep.subr.bf16.mxu0 %v1753_v2  ;;  %1423 = vmatprep.subr.bf16.mxu1 %v1675_v0 }
 0x644   :  { %v840_v6 = vpop.f32.mrb[20].mxu0  ;;  %v881_v7 = vpop.f32.mrb[20].mxu1 }
 0x645   :  { %v892_v9 = vadd.f32 %v891_v5, %v840_v6  ;;  %v842_v10 = vpop.f32.mrb[21].mxu0  ;;  %v1401_v11 = vpop.f32.mrb[21].mxu1  ;;  %v887_v54 = vadd.f32 %v1876_v47, %v881_v7 }
 0x646   :  { %v844_v13 = vpop.f32.mrb[22].mxu0  ;;  %v884_v44 = vpop.f32.mrb[22].mxu1  ;;  %v903_v38 = vadd.f32 %v902_v8, %v842_v10 }
 0x647   :  { %v1205_v45 = vmul.f32 -1.442695, %v892_v9  ;;  %v845_v46 = vpop.f32.mrb[23].mxu0  ;;  %v1402_v49 = vpop.f32.mrb[23].mxu1 }
 0x648   :  { %v1206_v50 = vmul.f32 -1.442695, %v903_v38  ;;  %v1119_v46 = vld [vmem:[#allocation3 + $0x54] sm:$0xff] }
 0x649   :  { %1536 = vpow2.f32 %v1205_v45  ;;  %v1130_v49 = vrot.slane %v1119_v46, 4  ;;  %v1121_v38 = vunpack.c.l.bf16 %v1119_v46 }
 0x64a   :  { %1538 = vpow2.f32 %v1206_v50 }
 0x653   :  { %v1537_v2 = vpop.eup %1536 }
 0x654   :  { %v896_v51 = vadd.f32 1.0, %v1537_v2  ;;  %v1539_v52 = vpop.eup %1538 }
 0x655   :  { %v907_v53 = vadd.f32 1.0, %v1539_v52 }
 0x656   :  { %1540 = vrcp.f32 %v896_v51  ;;  %v1132_v51 = vunpack.c.l.bf16 %v1130_v49 }
 0x657   :  { %1542 = vrcp.f32 %v907_v53 }
 0x660   :  { %v1541_v56 = vpop.eup %1540 }
 0x661   :  { %v910_v57 = vmul.f32 %v1541_v56, %v887_v54  ;;  %v1543_v58 = vpop.eup %1542 }
 0x662   :  { %v914_v59 = vsub.f32 1.0, %v1543_v58  ;;  %v916_v62 = vmul.f32 %v1543_v58, %v2055_v42  ;;  %v1005_v42 = vld [vmem:[#allocation3 + $0x50] ss:$12 sps:$4 sm:$0xff]  }
 0x663   :  { %v912_v48 = vadd.f32 %v911_v55, %v910_v57  ;;  %v1026_v4 = vunpack.c.l.bf16 %v1005_v42 }
 0x665   :  { %1544 = vtanh.f32 %v912_v48 }
 0x66f   :  { %v1545_v60 = vpop.eup %1544 }
 0x670   :  { %v915_v61 = vmul.f32 %v1545_v60, %v914_v59 }
 0x672   :  { %v2097_v63 = vadd.f32 %v916_v62, %v915_v61 }
 0x674   :  { %v918_v23 = vpack.c.bf16 %v2097_v63, %v2097_v63 }
 0x676   :  { %920 = vst [vmem:[#allocation9 + $0x14] sm:$0xf] %v918_v23  ;;  %954 = vmatmul.mubr.bf16.vlgmr.msra.gmra.mrb[24].mxu0 %v918_v23  ;;  %1420 = vmatmul.mubr.bf16.vlgmr.msra.gmra.mrb[24].mxu1 %v918_v23 }
 0x677   :  { %1037 = vmatpush1.bf16.msra.mxu0 %v1566_v25  ;;  %1424 = vmatpush3.bf16.msra.mxu1 %v1567_v28  ;;  %v1141_v28 = vunpack.c.h.bf16 %v1005_v42 }
 0x678   :  { %1038 = vmatprep.subr.bf16.mxu0 %v1568_v29  ;;  %1425 = vmatprep.subr.bf16.mxu1 %v1675_v0 }
 0x679   :  { %1068 = vmatprep.mubr.bf16.mxu0 %v1676_v1  ;;  %1439 = vmatprep.mubr.msk.bf16.mxu1 %vm1677_vm0, %v1675_v0  ;;  %v1573_v1 = vld [vmem:[#allocation8 + $0x48] ss:$12 sps:$4 sm:$0xff]  }
 0x67b   :  { %1039 = vmatpush1.bf16.msra.mxu0 %v1569_v30  ;;  %1426 = vmatpush3.bf16.msra.mxu1 %v1782_v12  ;;  %v1575_v12 = vld [vmem:[#allocation8 + $0x60] ss:$12 sps:$4 sm:$0xff]  }
 0x67c   :  { %1040 = vmatprep.subr.bf16.mxu0 %v1570_v31  ;;  %1427 = vmatprep.subr.bf16.mxu1 %v1675_v0 }
 0x67f   :  { %1041 = vmatpush1.bf16.msra.mxu0 %v1571_v32  ;;  %1428 = vmatpush3.bf16.msra.mxu1 %v1788_v14  ;;  %v1004_v14 = vld [vmem:[#allocation3 + $0x48] sm:$0xff] }
 0x680   :  { %1042 = vmatprep.subr.bf16.mxu0 %v1572_v33  ;;  %1429 = vmatprep.subr.bf16.mxu1 %v1675_v0 }
 0x683   :  { %1043 = vmatpush1.bf16.msra.mxu0 %v1573_v1  ;;  %1430 = vmatpush3.bf16.msra.mxu1 %v1798_v17 }
 0x684   :  { %1044 = vmatprep.subr.bf16.mxu0 %v1574_v34  ;;  %1431 = vmatprep.subr.bf16.mxu1 %v1675_v0 }
 0x687   :  { %1045 = vmatpush1.bf16.msra.mxu0 %v1575_v12  ;;  %1432 = vmatpush3.bf16.msra.mxu1 %v1808_v20 }
 0x688   :  { %1046 = vmatprep.subr.bf16.mxu0 %v1791_v15  ;;  %1433 = vmatprep.subr.bf16.mxu1 %v1675_v0  ;;  %v1015_v15 = vrot.slane %v1004_v14, 4 }
 0x68b   :  { %1047 = vmatpush1.bf16.msra.mxu0 %v1795_v16  ;;  %1434 = vmatpush3.bf16.msra.mxu1 %v1820_v24  ;;  %v1006_v16 = vunpack.c.l.bf16 %v1004_v14 }
 0x68c   :  { %1048 = vmatprep.subr.bf16.mxu0 %v1801_v18  ;;  %1435 = vmatprep.subr.bf16.mxu1 %v1675_v0  ;;  %v1017_v18 = vunpack.c.l.bf16 %v1015_v15 }
 0x68f   :  { %1049 = vmatpush1.bf16.msra.mxu0 %v1805_v19  ;;  %1436 = vmatpush3.bf16.msra.mxu1 %v1828_v26 }
 0x690   :  { %1050 = vmatprep.subr.bf16.mxu0 %v1811_v21  ;;  %1437 = vmatprep.subr.bf16.mxu1 %v1675_v0 }
 0x693   :  { %1051 = vmatpush1.bf16.msra.mxu0 %v1815_v22  ;;  %1438 = vmatpush3.bf16.msra.mxu1 %v1833_v27 }
 0x749   :  { %v955_v17 = vpop.f32.mrb[24].mxu0  ;;  %v996_v20 = vpop.f32.mrb[24].mxu1 }
 0x74a   :  { %v1007_v24 = vadd.f32 %v1006_v16, %v955_v17  ;;  %v957_v35 = vpop.f32.mrb[25].mxu0  ;;  %v1421_v36 = vpop.f32.mrb[25].mxu1  ;;  %v1002_v3 = vadd.f32 %v1876_v47, %v996_v20 }
 0x74b   :  { %v959_v19 = vpop.f32.mrb[26].mxu0  ;;  %v999_v37 = vpop.f32.mrb[26].mxu1  ;;  %v1018_v40 = vadd.f32 %v1017_v18, %v957_v35 }
 0x74c   :  { %v1207_v26 = vmul.f32 -1.442695, %v1007_v24  ;;  %v960_v39 = vpop.f32.mrb[27].mxu0  ;;  %v1422_v21 = vpop.f32.mrb[27].mxu1 }
 0x74d   :  { %v1208_v0 = vmul.f32 -1.442695, %v1018_v40 }
 0x74e   :  { %1546 = vpow2.f32 %v1207_v26 }
 0x74f   :  { %1548 = vpow2.f32 %v1208_v0 }
 0x758   :  { %v1547_v22 = vpop.eup %1546 }
 0x759   :  { %v1011_v27 = vadd.f32 1.0, %v1547_v22  ;;  %v1549_v41 = vpop.eup %1548 }
 0x75a   :  { %v1022_v43 = vadd.f32 1.0, %v1549_v41 }
 0x75b   :  { %1550 = vrcp.f32 %v1011_v27 }
 0x75c   :  { %1552 = vrcp.f32 %v1022_v43 }
 0x765   :  { %v1551_v5 = vpop.eup %1550 }
 0x766   :  { %v1025_v6 = vmul.f32 %v1551_v5, %v1002_v3  ;;  %v1553_v8 = vpop.eup %1552 }
 0x767   :  { %v1029_v9 = vsub.f32 1.0, %v1553_v8  ;;  %v1031_v13 = vmul.f32 %v1553_v8, %v2097_v63 }
 0x768   :  { %v1027_v7 = vadd.f32 %v1026_v4, %v1025_v6 }
 0x76a   :  { %1554 = vtanh.f32 %v1027_v7 }
 0x774   :  { %v1555_v10 = vpop.eup %1554 }
 0x775   :  { %v1030_v11 = vmul.f32 %v1555_v10, %v1029_v9 }
 0x777   :  { %v1032_v44 = vadd.f32 %v1031_v13, %v1030_v11 }
 0x779   :  { %v1033_v45 = vpack.c.bf16 %v1032_v44, %v1032_v44 }
 0x77b   :  { %1035 = vst [vmem:[#allocation9 + $0x18] sm:$0xf] %v1033_v45  ;;  %1069 = vmatmul.mubr.bf16.vlgmr.msra.gmra.mrb[28].mxu0 %v1033_v45  ;;  %1440 = vmatmul.mubr.bf16.vlgmr.msra.gmra.mrb[28].mxu1 %v1033_v45 }
 0x84e   :  { %v1070_v50 = vpop.f32.mrb[28].mxu0  ;;  %v1111_v2 = vpop.f32.mrb[28].mxu1 }
 0x84f   :  { %v1122_v52 = vadd.f32 %v1121_v38, %v1070_v50  ;;  %v1072_v53 = vpop.f32.mrb[29].mxu0  ;;  %v1441_v54 = vpop.f32.mrb[29].mxu1  ;;  %v1117_v25 = vadd.f32 %v1876_v47, %v1111_v2 }
 0x850   :  { %v1074_v55 = vpop.f32.mrb[30].mxu0  ;;  %v1114_v56 = vpop.f32.mrb[30].mxu1  ;;  %v1133_v59 = vadd.f32 %v1132_v51, %v1072_v53 }
 0x851   :  { %v1209_v57 = vmul.f32 -1.442695, %v1122_v52  ;;  %v1075_v48 = vpop.f32.mrb[31].mxu0  ;;  %v1442_v58 = vpop.f32.mrb[31].mxu1 }
 0x852   :  { %v1210_v60 = vmul.f32 -1.442695, %v1133_v59 }
 0x853   :  { %1556 = vpow2.f32 %v1209_v57 }
 0x854   :  { %1558 = vpow2.f32 %v1210_v60 }
 0x85d   :  { %v1557_v61 = vpop.eup %1556 }
 0x85e   :  { %v1126_v62 = vadd.f32 1.0, %v1557_v61  ;;  %v1559_v63 = vpop.eup %1558 }
 0x85f   :  { %v1137_v23 = vadd.f32 1.0, %v1559_v63 }
 0x860   :  { %1560 = vrcp.f32 %v1126_v62 }
 0x861   :  { %1562 = vrcp.f32 %v1137_v23 }
 0x86a   :  { %v1561_v29 = vpop.eup %1560 }
 0x86b   :  { %v1140_v30 = vmul.f32 %v1561_v29, %v1117_v25  ;;  %v1563_v32 = vpop.eup %1562 }
 0x86c   :  { %v1144_v33 = vsub.f32 1.0, %v1563_v32  ;;  %v1146_v12 = vmul.f32 %v1563_v32, %v1032_v44 }
 0x86d   :  { %v1142_v31 = vadd.f32 %v1141_v28, %v1140_v30 }
 0x86f   :  { %1564 = vtanh.f32 %v1142_v31 }
 0x879   :  { %v1565_v1 = vpop.eup %1564 }
 0x87a   :  { %v1145_v34 = vmul.f32 %v1565_v1, %v1144_v33 }
 0x87c   :  { %v1147_v14 = vadd.f32 %v1146_v12, %v1145_v34 }
 0x87e   :  { %v1148_v15 = vpack.c.bf16 %v1147_v14, %v1147_v14 }
 0x880   :  { %1150 = vst [vmem:[#allocation9 + $0x1c] sm:$0xf] %v1148_v15 }
 0x881   :  { %1653 = shalt.err (!%p1650_p0)
}
 0x882   :  { %s1654_s30 = scalar_lea.hbm %s2143_s4, 512 }
 0x883   :  { %p1655_p1 = scmp.ne.s32.totalorder %s2143_s4, %s1654_s30  ;;  %p1658_p2 = scmp.lt.u32.totalorder %s1654_s30, %s2143_s4 }
 0x885   :  { %p1660_p3 = pnand %p1658_p2, %p1655_p1 }
 0x887   :  { %1663 = shalt.err (!%p1660_p3)
}
 0x888   :  { %s1679_s9 = smov 64   ;;  %s1680_s10 = smov 4  }
 0x889   :  { %1163 = dma.vmem_to_hbm [thread:$0]  %s1158_s26, 512, %s2143_s4, [#allocation5], %s1679_s9, %s1679_s9, %s1680_s10  }
 0x88a   :  { %1668 = dma.done.wait [#allocation5], 512  }
 0x88b   :  { %1669 = vsyncadd [#allocation5], 4294966784 }
 0x88c   :  { %1167 = vsyncpa [#allocation4], 1 }
 0x88d   :  { %1168 = vsyncpa [#allocation7], 1 }
 0x88e   :  { %1169 = vsyncpa [#allocation5], 1 }

</bundles_post_ra>
